<compile_context>
chip_gen: v5e
topology: v5e:2x2
jax: 0.10.0
libtpu: 0.0.40
codegen_flags: <defaults>
</compile_context>

<pallas_src>
import functools

import jax
import jax.numpy as jnp
from jax.experimental import pallas as pl
from jax.experimental.pallas import tpu as pltpu


def _decoder_kernel(z_ref, w1_ref, b1_ref, w2_ref, b2_ref, w3_ref, b3_ref,
                    o_ref, *, tb, out_dim):
    # z is resident in VMEM for the whole grid; slice out this step's rows.
    row0 = pl.multiple_of(pl.program_id(0) * tb, 8)
    z = z_ref[pl.ds(row0, tb), :]                      # (tb, L) f32

    # ----- Layer 1 on the VPU: (tb, L) x (L, 128) with L tiny (2) ------------
    # A K=2 systolic MXU pass is pure fill/drain waste -> broadcast FMAs.
    w1 = w1_ref[...]                                   # (L, 128) f32
    h1 = b1_ref[...]                                   # (1, 128) f32, broadcasts
    for k in range(w1.shape[0]):                       # static unroll over latent_dim
        h1 = h1 + z[:, k:k + 1] * w1[k:k + 1, :]
    h1 = jnp.maximum(h1, 0.0)                          # (tb, 128) f32

    # ----- Layer 2 on the MXU: bf16 operands, f32 accumulation ---------------
    h2 = jnp.dot(h1.astype(jnp.bfloat16), w2_ref[...],
                 preferred_element_type=jnp.float32)
    h2 = jnp.maximum(h2 + b2_ref[...], 0.0)            # (tb, 512) f32

    # ----- Layer 3 on the MXU: lane-aligned N (896 = 7*128) in VMEM, but only
    # the real out_dim columns are stored -> HBM writeback is the true width.
    out = jnp.dot(h2.astype(jnp.bfloat16), w3_ref[...],
                  preferred_element_type=jnp.float32)
    out = out + b3_ref[...]                             # (tb, n_pad) f32
    o_ref[...] = out[:, :out_dim].astype(o_ref.dtype)   # (tb, out_dim)


def prepare_decoder_params(params):
    """One-time weight prep, hoisted out of the forward pass:
    cast MXU weights to bf16 and pad layer-3's output dim to a multiple of 128."""
    w1 = params["w1"].astype(jnp.float32)
    b1 = params["b1"].reshape(1, -1).astype(jnp.float32)
    w2 = params["w2"].astype(jnp.bfloat16)              # bf16 weights, f32 accumulate
    b2 = params["b2"].reshape(1, -1).astype(jnp.float32)
    w3 = params["w3"]
    b3 = params["b3"].reshape(1, -1)
    out_dim = w3.shape[1]
    out_pad = (-out_dim) % 128                           # 784 -> pad 112 -> 896
    w3p = jnp.pad(w3, ((0, 0), (0, out_pad))).astype(jnp.bfloat16)
    b3p = jnp.pad(b3, ((0, 0), (0, out_pad))).astype(jnp.float32)
    return dict(w1=w1, b1=b1, w2=w2, b2=b2, w3p=w3p, b3p=b3p, out_dim=out_dim)


def client_custom_decoder(z, prepared, *, block_b=512, out_dtype=jnp.float32):
    """z: (B, latent_dim) float32. prepared: output of prepare_decoder_params."""
    w1, b1 = prepared["w1"], prepared["b1"]
    w2, b2 = prepared["w2"], prepared["b2"]
    w3p, b3p = prepared["w3p"], prepared["b3p"]
    out_dim = prepared["out_dim"]
    n_pad = w3p.shape[1]

    B, L = z.shape

    # Batch tile: multiple of 8 sublanes, capped at block_b. block_b=512 fills
    # the 256-row MXU on v6e/v7x and amortizes per-step + MXU weight-push
    # overhead while the double-buffered (tb, 784) f32 output stays well inside
    # v7x's 64 MiB VMEM. Pad B up so every grid step is full; padded rows are
    # sliced away at the end.
    tb = min(block_b, max(8, ((B + 7) // 8) * 8))
    Bp = ((B + tb - 1) // tb) * tb
    zp = z.astype(jnp.float32)
    if Bp != B:
        zp = jnp.pad(zp, ((0, Bp - B), (0, 0)))
    grid = (Bp // tb,)
    # TODO(synk): on v7x, pick tb so Bp // tb is even (>= 2) for large B so the
    # "parallel" batch axis actually splits across both TensorCores.

    # Weights/biases/z: full-array blocks, same block index every grid step
    # (kept resident in VMEM across the whole grid). pipeline_mode=Buffered(1)
    # for the resident operands is a further minor VMEM saving, skipped here
    # for lowering robustness.
    resident = lambda a: pl.BlockSpec(a.shape, lambda i: (0,) * a.ndim)

    out_itemsize = jnp.dtype(out_dtype).itemsize

    # Advisory cost estimate for XLA scheduling around the custom call.
    flops = 2 * Bp * (L * 128 + 128 * 512 + 512 * n_pad)
    bytes_accessed = (zp.size * 4 + w1.size * 4 + b1.size * 4 +
                      w2.size * 2 + b2.size * 4 +
                      w3p.size * 2 + b3p.size * 4 +
                      Bp * out_dim * out_itemsize)

    # VMEM budget: double-buffered resident weights + resident z + double-
    # buffered output tiles + f32 intermediates, plus headroom. Safe on v7x.
    weight_bytes = (w1.size * 4 + b1.size * 4 + w2.size * 2 + b2.size * 4 +
                    w3p.size * 2 + b3p.size * 4)
    io_bytes = zp.size * 4 + 2 * tb * out_dim * out_itemsize
    inter_bytes = tb * (128 + 512 + n_pad) * 4
    vmem_limit = int(min(64 << 20,
                         2 * weight_bytes + io_bytes + 2 * inter_bytes + (4 << 20)))

    kernel = functools.partial(_decoder_kernel, tb=tb, out_dim=out_dim)

    out = pl.pallas_call(
        kernel,
        out_shape=jax.ShapeDtypeStruct((Bp, out_dim), out_dtype),
        grid=grid,
        in_specs=[
            resident(zp),                 # z fully resident; sliced per tile in-kernel
            resident(w1), resident(b1),
            resident(w2), resident(b2),
            resident(w3p), resident(b3p),
        ],
        # Block last dim == full array last dim (784) -> legal, and the HBM
        # writeback is the true output width (no post-kernel column slice).
        out_specs=pl.BlockSpec((tb, out_dim), lambda i: (i, 0)),
        compiler_params=pltpu.CompilerParams(
            dimension_semantics=("parallel",),
            vmem_limit_bytes=vmem_limit,
        ),
        cost_estimate=pl.CostEstimate(
            flops=int(flops), transcendentals=0,
            bytes_accessed=int(bytes_accessed)),
    )(zp, w1, b1, w2, b2, w3p, b3p)

    if Bp != B:
        out = out[:B]                      # padded batch rows carry bias garbage
    return out


def init_params(key, latent_dim=2, output_dim=784):
    """Deterministic init mimicking PyTorch Linear default:
    U(-1/sqrt(fan_in), 1/sqrt(fan_in)) for both weight and bias."""
    dims = [(latent_dim, 128), (128, 512), (512, output_dim)]
    params = {}
    for i, (fan_in, fan_out) in enumerate(dims, start=1):
        key, kw, kb = jax.random.split(key, 3)
        bound = 1.0 / jnp.sqrt(float(fan_in))
        params[f"w{i}"] = jax.random.uniform(
            kw, (fan_in, fan_out), jnp.float32, minval=-bound, maxval=bound
        )
        params[f"b{i}"] = jax.random.uniform(
            kb, (1, fan_out), jnp.float32, minval=-bound, maxval=bound
        )
    return params


def reference_bf16(z, params):
    """Pure-JAX reference mirroring the kernel's bf16-weight / f32-acc numerics."""
    h1 = jnp.maximum(z @ params["w1"] + params["b1"], 0.0)
    h2 = jnp.dot(h1.astype(jnp.bfloat16), params["w2"].astype(jnp.bfloat16),
                 preferred_element_type=jnp.float32) + params["b2"]
    h2 = jnp.maximum(h2, 0.0)
    out = jnp.dot(h2.astype(jnp.bfloat16), params["w3"].astype(jnp.bfloat16),
                  preferred_element_type=jnp.float32) + params["b3"]
    return out


def reference_f32(z, params):
    """Full-precision reference (module semantics)."""
    h1 = jnp.maximum(z @ params["w1"] + params["b1"], 0.0)
    h2 = jnp.maximum(h1 @ params["w2"] + params["b2"], 0.0)
    return h2 @ params["w3"] + params["b3"]


if __name__ == "__main__":
    key = jax.random.PRNGKey(0)
    kz, kz2, kp = jax.random.split(key, 3)

    LATENT, OUT = 2, 784
    params = init_params(kp, latent_dim=LATENT, output_dim=OUT)
    prepared = prepare_decoder_params(params)   # one-time weight prep (hoisted)

    # Small case (single grid step).
    B = 8
    z = jax.random.normal(kz, (B, LATENT), dtype=jnp.float32)
    out = jax.block_until_ready(client_custom_decoder(z, prepared))
    assert out.shape == (B, OUT), out.shape
    assert jnp.allclose(out, reference_bf16(z, params), atol=2e-3, rtol=2e-3), \
        "mismatch vs bf16-mirrored reference (B=8)"
    assert jnp.allclose(out, reference_f32(z, params), atol=3e-2, rtol=3e-2), \
        "mismatch vs f32 reference (B=8)"

    # Larger, non-multiple-of-tile batch: exercises batch padding + row slice.
    B2 = 260
    z2 = jax.random.normal(kz2, (B2, LATENT), dtype=jnp.float32)
    out2 = jax.block_until_ready(client_custom_decoder(z2, prepared))
    assert out2.shape == (B2, OUT), out2.shape
    assert jnp.allclose(out2, reference_bf16(z2, params), atol=2e-3, rtol=2e-3), \
        "mismatch vs bf16-mirrored reference (B=260)"

    print("KERNEL_OK")
</pallas_src>

<mosaic_0001>
module attributes {stable_mosaic.version = 11 : i64} {
  func.func @_decoder_kernel(%arg0: i32, %arg1: memref<8x2xf32, #tpu.memory_space<vmem>>, %arg2: memref<2x128xf32, #tpu.memory_space<vmem>>, %arg3: memref<1x128xf32, #tpu.memory_space<vmem>>, %arg4: memref<128x512xbf16, #tpu.memory_space<vmem>>, %arg5: memref<1x512xf32, #tpu.memory_space<vmem>>, %arg6: memref<512x896xbf16, #tpu.memory_space<vmem>>, %arg7: memref<1x896xf32, #tpu.memory_space<vmem>>, %arg8: memref<8x784xf32, #tpu.memory_space<vmem>>) attributes {dimension_semantics = [#tpu.dimension_semantics<parallel>], iteration_bounds = array<i64: 1>, scalar_prefetch = 0 : i64, scratch_operands = 0 : i64, tpu.core_type = #tpu.core_type<tc>, window_params = [{pipeline_mode = #tpu.pipeline_mode<synchronous>, transform_indices = @transform_0, window_bounds = array<i64: 8, 2>}, {pipeline_mode = #tpu.pipeline_mode<synchronous>, transform_indices = @transform_1, window_bounds = array<i64: 2, 128>}, {pipeline_mode = #tpu.pipeline_mode<synchronous>, transform_indices = @transform_2, window_bounds = array<i64: 1, 128>}, {pipeline_mode = #tpu.pipeline_mode<synchronous>, transform_indices = @transform_3, window_bounds = array<i64: 128, 512>}, {pipeline_mode = #tpu.pipeline_mode<synchronous>, transform_indices = @transform_4, window_bounds = array<i64: 1, 512>}, {pipeline_mode = #tpu.pipeline_mode<synchronous>, transform_indices = @transform_5, window_bounds = array<i64: 512, 896>}, {pipeline_mode = #tpu.pipeline_mode<synchronous>, transform_indices = @transform_6, window_bounds = array<i64: 1, 896>}, {transform_indices = @transform_7, window_bounds = array<i64: 8, 784>}]} {
    %c8_i32 = arith.constant 8 : i32
    %0 = arith.muli %arg0, %c8_i32 : i32
    %1 = tpu.assume_multiple %0, 8 : i32
    %2 = arith.index_cast %1 : i32 to index
    %c0 = arith.constant 0 : index
    %3 = vector.load %arg1[%2, %c0] : memref<8x2xf32, #tpu.memory_space<vmem>>, vector<8x2xf32>
    %c0_0 = arith.constant 0 : index
    %c0_1 = arith.constant 0 : index
    %4 = vector.load %arg2[%c0_0, %c0_1] : memref<2x128xf32, #tpu.memory_space<vmem>>, vector<2x128xf32>
    %c0_2 = arith.constant 0 : index
    %c0_3 = arith.constant 0 : index
    %5 = vector.load %arg3[%c0_2, %c0_3] : memref<1x128xf32, #tpu.memory_space<vmem>>, vector<1x128xf32>
    %6 = vector.extract_strided_slice %3 {offsets = [0, 0], sizes = [8, 1], strides = [1, 1]} : vector<8x2xf32> to vector<8x1xf32>
    %7 = vector.extract_strided_slice %4 {offsets = [0, 0], sizes = [1, 128], strides = [1, 1]} : vector<2x128xf32> to vector<1x128xf32>
    %8 = vector.broadcast %6 : vector<8x1xf32> to vector<8x128xf32>
    %9 = vector.broadcast %7 : vector<1x128xf32> to vector<8x128xf32>
    %10 = arith.mulf %8, %9 : vector<8x128xf32>
    %11 = vector.broadcast %5 : vector<1x128xf32> to vector<8x128xf32>
    %12 = arith.addf %11, %10 : vector<8x128xf32>
    %13 = vector.extract_strided_slice %3 {offsets = [0, 1], sizes = [8, 1], strides = [1, 1]} : vector<8x2xf32> to vector<8x1xf32>
    %14 = vector.extract_strided_slice %4 {offsets = [1, 0], sizes = [1, 128], strides = [1, 1]} : vector<2x128xf32> to vector<1x128xf32>
    %15 = vector.broadcast %13 : vector<8x1xf32> to vector<8x128xf32>
    %16 = vector.broadcast %14 : vector<1x128xf32> to vector<8x128xf32>
    %17 = arith.mulf %15, %16 : vector<8x128xf32>
    %18 = arith.addf %12, %17 : vector<8x128xf32>
    %cst = arith.constant 0.000000e+00 : f32
    %19 = vector.broadcast %cst : f32 to vector<8x128xf32>
    %20 = arith.maximumf %18, %19 : vector<8x128xf32>
    %21 = arith.truncf %20 : vector<8x128xf32> to vector<8x128xbf16>
    %c0_4 = arith.constant 0 : index
    %c0_5 = arith.constant 0 : index
    %22 = vector.load %arg4[%c0_4, %c0_5] : memref<128x512xbf16, #tpu.memory_space<vmem>>, vector<128x512xbf16>
    %cst_6 = arith.constant dense<0.000000e+00> : vector<8x512xf32>
    %23 = tpu.matmul %21, %22, %cst_6 {dimension_numbers = #tpu.dot_dimension_numbers<[1], [0], [0], [1], [0, 0, 1, 1], [], []>} : vector<8x128xbf16>, vector<128x512xbf16>, vector<8x512xf32> -> vector<8x512xf32>
    %c0_7 = arith.constant 0 : index
    %c0_8 = arith.constant 0 : index
    %24 = vector.load %arg5[%c0_7, %c0_8] : memref<1x512xf32, #tpu.memory_space<vmem>>, vector<1x512xf32>
    %25 = vector.broadcast %24 : vector<1x512xf32> to vector<8x512xf32>
    %26 = arith.addf %23, %25 : vector<8x512xf32>
    %cst_9 = arith.constant 0.000000e+00 : f32
    %27 = vector.broadcast %cst_9 : f32 to vector<8x512xf32>
    %28 = arith.maximumf %26, %27 : vector<8x512xf32>
    %29 = arith.truncf %28 : vector<8x512xf32> to vector<8x512xbf16>
    %c0_10 = arith.constant 0 : index
    %c0_11 = arith.constant 0 : index
    %30 = vector.load %arg6[%c0_10, %c0_11] : memref<512x896xbf16, #tpu.memory_space<vmem>>, vector<512x896xbf16>
    %cst_12 = arith.constant dense<0.000000e+00> : vector<8x896xf32>
    %31 = tpu.matmul %29, %30, %cst_12 {dimension_numbers = #tpu.dot_dimension_numbers<[1], [0], [0], [1], [0, 0, 1, 1], [], []>} : vector<8x512xbf16>, vector<512x896xbf16>, vector<8x896xf32> -> vector<8x896xf32>
    %c0_13 = arith.constant 0 : index
    %c0_14 = arith.constant 0 : index
    %32 = vector.load %arg7[%c0_13, %c0_14] : memref<1x896xf32, #tpu.memory_space<vmem>>, vector<1x896xf32>
    %33 = vector.broadcast %32 : vector<1x896xf32> to vector<8x896xf32>
    %34 = arith.addf %31, %33 : vector<8x896xf32>
    %35 = vector.extract_strided_slice %34 {offsets = [0, 0], sizes = [8, 784], strides = [1, 1]} : vector<8x896xf32> to vector<8x784xf32>
    %c0_15 = arith.constant 0 : index
    %c0_16 = arith.constant 0 : index
    %36 = vector.load %arg8[%c0_15, %c0_16] : memref<8x784xf32, #tpu.memory_space<vmem>>, vector<8x784xf32>
    tpu.vector_store %arg8[%c0_15, %c0_16], %35 {strides = array<i32>} : memref<8x784xf32, #tpu.memory_space<vmem>>, vector<8x784xf32>,
    return
  }
  func.func @transform_0(%arg0: i32) -> (i32, i32) {
    %c0_i32 = arith.constant 0 : i32
    %c0_i32_0 = arith.constant 0 : i32
    %c0_i32_1 = arith.constant 0 : i32
    return %c0_i32, %c0_i32_0 : i32, i32
  }
  func.func @transform_1(%arg0: i32) -> (i32, i32) {
    %c0_i32 = arith.constant 0 : i32
    %c0_i32_0 = arith.constant 0 : i32
    %c0_i32_1 = arith.constant 0 : i32
    return %c0_i32, %c0_i32_0 : i32, i32
  }
  func.func @transform_2(%arg0: i32) -> (i32, i32) {
    %c0_i32 = arith.constant 0 : i32
    %c0_i32_0 = arith.constant 0 : i32
    %c0_i32_1 = arith.constant 0 : i32
    return %c0_i32, %c0_i32_0 : i32, i32
  }
  func.func @transform_3(%arg0: i32) -> (i32, i32) {
    %c0_i32 = arith.constant 0 : i32
    %c0_i32_0 = arith.constant 0 : i32
    %c0_i32_1 = arith.constant 0 : i32
    return %c0_i32, %c0_i32_0 : i32, i32
  }
  func.func @transform_4(%arg0: i32) -> (i32, i32) {
    %c0_i32 = arith.constant 0 : i32
    %c0_i32_0 = arith.constant 0 : i32
    %c0_i32_1 = arith.constant 0 : i32
    return %c0_i32, %c0_i32_0 : i32, i32
  }
  func.func @transform_5(%arg0: i32) -> (i32, i32) {
    %c0_i32 = arith.constant 0 : i32
    %c0_i32_0 = arith.constant 0 : i32
    %c0_i32_1 = arith.constant 0 : i32
    return %c0_i32, %c0_i32_0 : i32, i32
  }
  func.func @transform_6(%arg0: i32) -> (i32, i32) {
    %c0_i32 = arith.constant 0 : i32
    %c0_i32_0 = arith.constant 0 : i32
    %c0_i32_1 = arith.constant 0 : i32
    return %c0_i32, %c0_i32_0 : i32, i32
  }
  func.func @transform_7(%arg0: i32) -> (i32, i32) {
    %c0_i32 = arith.constant 0 : i32
    %c0_i32_0 = arith.constant 0 : i32
    return %arg0, %c0_i32 : i32, i32
  }
}

</mosaic_0001>

<bundles_post_ra>
// kernel: tpu_custom_call.1
= control target key start
LH: loop header
LB: loop body
LE: loop exit
PB: predicated region body
PF: predicated region fallthrough
CT: control target
= control target key end

     0   :  { %12 = vsyncpa [#allocation3], 0  ;;  %s3687_s0 = inlined_call_operand.vmem [shape: f32[8,2], index: 0, kind: input, shape index: {}]   ;;  %s3688_s1 = inlined_call_operand.vmem [shape: f32[2,128], index: 1, kind: input, shape index: {}]   ;;  %s3689_s2 = inlined_call_operand.hbm [shape: f32[1,128], index: 2, kind: input, shape index: {}]   ;;  %s3690_s3 = inlined_call_operand.hbm [shape: bf16[128,512], index: 3, kind: input, shape index: {}]   ;;  %s3691_s4 = inlined_call_operand.vmem [shape: f32[1,512], index: 4, kind: input, shape index: {}]   ;;  %s3692_s5 = inlined_call_operand.hbm [shape: bf16[512,896], index: 5, kind: input, shape index: {}]   ;;  %s3693_s6 = inlined_call_operand.vmem [shape: f32[1,896], index: 6, kind: input, shape index: {}]   ;;  %s3694_s7 = inlined_call_operand.hbm [shape: f32[8,784], index: 7, kind: output, shape index: {}]  }
   0x1   :  { %13 = vsyncpa [#allocation6], 0  ;;  %s34_s26 = sshll.u32 %s3690_s3, 4  ;;  %s35_s26 = int_to_ptr.hbm [resolvable:$true] %s34_s26 }
   0x2   :  { %14 = vsyncpa [#allocation4], 0  ;;  %s3568_s27 = smov [#allocation5]   ;;  %s24_s8 = sshll.u32 %s3689_s2, 4  ;;  %s25_s8 = int_to_ptr.hbm [resolvable:$true] %s24_s8 }
   0x3   :  { %s36_s28 = sshll.u32 %s3568_s27, 4  ;;  %s3569_s9 = smov 256   ;;  %s37_s28 = int_to_ptr.vmem [resolvable:$true] %s36_s28 }
   0x4   :  { %s3570_s10 = smov 16   ;;  %s3571_s11 = smov [#allocation2]  }
   0x5   :  { %42 = dma.hbm_to_vmem [thread:$0]  %s35_s26, 4096, %s37_s28, [#allocation6], %s3569_s9, %s3569_s9, %s3570_s10  }
   0x6   :  { %s26_s12 = sshll.u32 %s3571_s11, 4  ;;  %s49_s15 = sshll.u32 %s3692_s5, 4  ;;  %s27_s12 = int_to_ptr.vmem [resolvable:$true] %s26_s12  ;;  %s50_s15 = int_to_ptr.hbm [resolvable:$true] %s49_s15 }
   0x7   :  { %29 = dma.hbm_to_vmem [thread:$0]  %s25_s8, 16, %s27_s12, [#allocation3]  }
   0x8   :  { %s3572_s3 = smov [#allocation7]   ;;  %s3573_s17 = smov 448  }
   0x9   :  { %s51_s16 = sshll.u32 %s3572_s3, 4  ;;  %s3574_s18 = smov 28   ;;  %s52_s16 = int_to_ptr.vmem [resolvable:$true] %s51_s16 }
   0xa   :  { %57 = dma.hbm_to_vmem [thread:$0]  %s50_s15, 28672, %s52_s16, [#allocation6], %s3573_s17, %s3573_s17, %s3574_s18  }
   0xb   :  { %3562 = dma.done.wait [#allocation3], 16  }
   0xc   :  { %3563 = vsyncadd [#allocation3], 4294967280 }
   0xd   :  { %3564 = dma.done.wait [#allocation6], 32768  }
   0xe   :  { %3565 = vsyncadd [#allocation6], 4294934528  ;;  %v3575_v0 = vmov 0   ;;  %v74_v1 = vld [vmem:[%s3687_s0] sm:$0xff]  ;;  %v2287_v2 = vld [vmem:[#allocation5 + $0xe0] sm:$0xf] }
   0xf   :  { %3463 = vset.pattern.permute.xlu0 %v3575_v0  ;;  %v3227_v3 = vld [vmem:[#allocation5 + $0xec] sm:$0xf0]  ;;  %v3225_v5 = vld [vmem:[#allocation5 + $0xe4] sm:$0xf]  ;;  %v2289_v6 = vld [vmem:[#allocation5 + $0xf0] sm:$0xf0] }
  0x10   :  { %79 = vperm.xlu0 %3463, %v74_v1   ;;  %v2288_v4 = vor.u32 %v3227_v3, %v2287_v2  ;;  %v2295_v7 = vld [vmem:[#allocation5 + $0xe8] sm:$0xf]  ;;  %v2292_v8 = vor.u32 %v3225_v5, %v2289_v6  ;;  %v3228_v9 = vld [vmem:[#allocation5 + $0xf4] sm:$0xf0]  ;;  %v3226_v10 = vld [vmem:[#allocation5 + $0xec] sm:$0xf] }
  0x11   :  { %v2297_v11 = vld [vmem:[#allocation5 + $0xf8] sm:$0xf0]  ;;  %v2296_v12 = vor.u32 %v3228_v9, %v2295_v7  ;;  %v2271_v14 = vld [vmem:[#allocation5 + $0xc0] sm:$0xf]  ;;  %v3223_v15 = vld [vmem:[#allocation5 + $0xcc] sm:$0xf0] }
  0x12   :  { %299 = vmatpush.bf16.msra.mxu0 %v2288_v4  ;;  %v2300_v13 = vor.u32 %v3226_v10, %v2297_v11  ;;  %v3221_v16 = vld [vmem:[#allocation5 + $0xc4] sm:$0xf]  ;;  %312 = vmatpush.bf16.msra.mxu1 %v2292_v8  ;;  %v2272_v17 = vor.u32 %v3223_v15, %v2271_v14  ;;  %v2273_v18 = vld [vmem:[#allocation5 + $0xd0] sm:$0xf0]  ;;  %v2279_v19 = vld [vmem:[#allocation5 + $0xc8] sm:$0xf] }
  0x13   :  { %v3224_v20 = vld [vmem:[#allocation5 + $0xd4] sm:$0xf0]  ;;  %325 = vmatpush.bf16.msra.mxu2 %v2296_v12  ;;  %v2276_v21 = vor.u32 %v3221_v16, %v2273_v18  ;;  %v3222_v23 = vld [vmem:[#allocation5 + $0xcc] sm:$0xf]  ;;  %v2281_v24 = vld [vmem:[#allocation5 + $0xd8] sm:$0xf0] }
  0x14   :  { %338 = vmatpush.bf16.msra.mxu3 %v2300_v13  ;;  %v2280_v22 = vor.u32 %v3224_v20, %v2279_v19  ;;  %v2255_v25 = vld [vmem:[#allocation5 + $0xa0] sm:$0xf]  ;;  %v2284_v26 = vor.u32 %v3222_v23, %v2281_v24  ;;  %v3219_v27 = vld [vmem:[#allocation5 + $0xac] sm:$0xf0]  ;;  %v3217_v28 = vld [vmem:[#allocation5 + $0xa4] sm:$0xf] }
  0x15   :  { %v2257_v29 = vld [vmem:[#allocation5 + $0xb0] sm:$0xf0]  ;;  %v2256_v30 = vor.u32 %v3219_v27, %v2255_v25  ;;  %v2263_v31 = vld [vmem:[#allocation5 + $0xa8] sm:$0xf]  ;;  %v3220_v32 = vld [vmem:[#allocation5 + $0xb4] sm:$0xf0] }
  0x16   :  { %300 = vmatpush.bf16.msra.mxu0 %v2272_v17  ;;  %v3218_v33 = vld [vmem:[#allocation5 + $0xac] sm:$0xf]  ;;  %313 = vmatpush.bf16.msra.mxu1 %v2276_v21  ;;  %v2260_v34 = vor.u32 %v3217_v28, %v2257_v29  ;;  %v2265_v35 = vld [vmem:[#allocation5 + $0xb8] sm:$0xf0]  ;;  %v2239_v36 = vld [vmem:[#allocation5 + $0x80] sm:$0xf]  ;;  %v2264_v39 = vor.u32 %v3220_v32, %v2263_v31 }
  0x17   :  { %v3215_v37 = vld [vmem:[#allocation5 + $0x8c] sm:$0xf0]  ;;  %v3576_v38 = vmov 1   ;;  %326 = vmatpush.bf16.msra.mxu2 %v2280_v22  ;;  %v3213_v40 = vld [vmem:[#allocation5 + $0x84] sm:$0xf]  ;;  %v2268_v42 = vor.u32 %v3218_v33, %v2265_v35  ;;  %s2162_s25 = sshll.u32 %s3694_s7, 4  ;;  %s2163_s25 = int_to_ptr.hbm [resolvable:$true] %s2162_s25 }
  0x18   :  { %3464 = vset.pattern.permute.xlu0 %v3576_v38  ;;  %v2241_v41 = vld [vmem:[#allocation5 + $0x90] sm:$0xf0]  ;;  %339 = vmatpush.bf16.msra.mxu3 %v2284_v26  ;;  %v2247_v43 = vld [vmem:[#allocation5 + $0x88] sm:$0xf]  ;;  %v3216_v44 = vld [vmem:[#allocation5 + $0x94] sm:$0xf0]  ;;  %v2240_v45 = vor.u32 %v3215_v37, %v2239_v36 }
  0x19   :  { %89 = vperm.xlu0 %3464, %v74_v1   ;;  %v3214_v46 = vld [vmem:[#allocation5 + $0x8c] sm:$0xf]  ;;  %v2249_v47 = vld [vmem:[#allocation5 + $0x98] sm:$0xf0]  ;;  %v2244_v48 = vor.u32 %v3213_v40, %v2241_v41  ;;  %v2248_v49 = vor.u32 %v3216_v44, %v2247_v43  ;;  %v2223_v51 = vld [vmem:[#allocation5 + $0x60] sm:$0xf] }
  0x1a   :  { %301 = vmatpush.bf16.msra.mxu0 %v2256_v30  ;;  %314 = vmatpush.bf16.msra.mxu1 %v2260_v34  ;;  %v2252_v50 = vor.u32 %v3214_v46, %v2249_v47  ;;  %v3211_v52 = vld [vmem:[#allocation5 + $0x6c] sm:$0xf0]  ;;  %v3209_v53 = vld [vmem:[#allocation5 + $0x64] sm:$0xf]  ;;  %v2225_v55 = vld [vmem:[#allocation5 + $0x70] sm:$0xf0] }
  0x1b   :  { %327 = vmatpush.bf16.msra.mxu2 %v2264_v39  ;;  %v2224_v54 = vor.u32 %v3211_v52, %v2223_v51  ;;  %v2231_v56 = vld [vmem:[#allocation5 + $0x68] sm:$0xf]  ;;  %v3212_v57 = vld [vmem:[#allocation5 + $0x74] sm:$0xf0]  ;;  %v2228_v58 = vor.u32 %v3209_v53, %v2225_v55  ;;  %v3210_v60 = vld [vmem:[#allocation5 + $0x6c] sm:$0xf] }
  0x1c   :  { %340 = vmatpush.bf16.msra.mxu3 %v2268_v42  ;;  %v2232_v59 = vor.u32 %v3212_v57, %v2231_v56  ;;  %v2233_v61 = vld [vmem:[#allocation5 + $0x78] sm:$0xf0]  ;;  %v2207_v63 = vld [vmem:[#allocation5 + $0x40] sm:$0xf]  ;;  %v3207_v0 = vld [vmem:[#allocation5 + $0x4c] sm:$0xf0] }
  0x1d   :  { %v2236_v62 = vor.u32 %v3210_v60, %v2233_v61  ;;  %v3205_v1 = vld [vmem:[#allocation5 + $0x44] sm:$0xf]  ;;  %v2208_v2 = vor.u32 %v3207_v0, %v2207_v63  ;;  %v2209_v3 = vld [vmem:[#allocation5 + $0x50] sm:$0xf0]  ;;  %v2215_v4 = vld [vmem:[#allocation5 + $0x48] sm:$0xf] }
  0x1e   :  { %302 = vmatpush.bf16.msra.mxu0 %v2240_v45  ;;  %315 = vmatpush.bf16.msra.mxu1 %v2244_v48  ;;  %v3208_v5 = vld [vmem:[#allocation5 + $0x54] sm:$0xf0]  ;;  %v2212_v6 = vor.u32 %v3205_v1, %v2209_v3  ;;  %v3206_v8 = vld [vmem:[#allocation5 + $0x4c] sm:$0xf]  ;;  %v2217_v9 = vld [vmem:[#allocation5 + $0x58] sm:$0xf0] }
  0x1f   :  { %328 = vmatpush.bf16.msra.mxu2 %v2248_v49  ;;  %v2216_v7 = vor.u32 %v3208_v5, %v2215_v4  ;;  %v2220_v10 = vor.u32 %v3206_v8, %v2217_v9  ;;  %v2191_v11 = vld [vmem:[#allocation5 + $0x20] sm:$0xf]  ;;  %v3203_v12 = vld [vmem:[#allocation5 + $0x2c] sm:$0xf0]  ;;  %v3201_v13 = vld [vmem:[#allocation5 + $0x24] sm:$0xf] }
  0x20   :  { %341 = vmatpush.bf16.msra.mxu3 %v2252_v50  ;;  %v2192_v14 = vor.u32 %v3203_v12, %v2191_v11  ;;  %v2193_v15 = vld [vmem:[#allocation5 + $0x30] sm:$0xf0]  ;;  %v2199_v16 = vld [vmem:[#allocation5 + $0x28] sm:$0xf]  ;;  %v3204_v17 = vld [vmem:[#allocation5 + $0x34] sm:$0xf0] }
  0x21   :  { %v2196_v18 = vor.u32 %v3201_v13, %v2193_v15  ;;  %v2200_v19 = vor.u32 %v3204_v17, %v2199_v16  ;;  %v3202_v20 = vld [vmem:[#allocation5 + $0x2c] sm:$0xf]  ;;  %v2201_v21 = vld [vmem:[#allocation5 + $0x38] sm:$0xf0]  ;;  %v2175_v23 = vld [vmem:[#allocation5] sm:$0xf] }
  0x22   :  { %303 = vmatpush.bf16.msra.mxu0 %v2224_v54  ;;  %316 = vmatpush.bf16.msra.mxu1 %v2228_v58  ;;  %v2204_v22 = vor.u32 %v3202_v20, %v2201_v21  ;;  %v3199_v24 = vld [vmem:[#allocation5 + $0xc] sm:$0xf0]  ;;  %v3197_v25 = vld [vmem:[#allocation5 + $0x4] sm:$0xf]  ;;  %v2177_v27 = vld [vmem:[#allocation5 + $0x10] sm:$0xf0] }
  0x23   :  { %329 = vmatpush.bf16.msra.mxu2 %v2232_v59  ;;  %v2176_v26 = vor.u32 %v3199_v24, %v2175_v23  ;;  %v2183_v28 = vld [vmem:[#allocation5 + $0x8] sm:$0xf]  ;;  %v3200_v29 = vld [vmem:[#allocation5 + $0x14] sm:$0xf0]  ;;  %v2180_v30 = vor.u32 %v3197_v25, %v2177_v27  ;;  %v3198_v32 = vld [vmem:[#allocation5 + $0xc] sm:$0xf] }
  0x24   :  { %342 = vmatpush.bf16.msra.mxu3 %v2236_v62  ;;  %v2184_v31 = vor.u32 %v3200_v29, %v2183_v28  ;;  %v2185_v33 = vld [vmem:[#allocation5 + $0x18] sm:$0xf0]  ;;  %v2499_v35 = vld [vmem:[#allocation7 + $0x188] sm:$0xf]  ;;  %v3281_v36 = vld [vmem:[#allocation7 + $0x1a0] sm:$0xf0] }
  0x25   :  { %v2188_v34 = vor.u32 %v3198_v32, %v2185_v33  ;;  %v2723_v37 = vld [vmem:[#allocation7 + $0x348] sm:$0xf]  ;;  %v2500_v38 = vor.u32 %v3281_v36, %v2499_v35  ;;  %v3337_v39 = vld [vmem:[#allocation7 + $0x360] sm:$0xf0]  ;;  %v2471_v40 = vld [vmem:[#allocation7 + $0x150] sm:$0xf] }
  0x26   :  { %304 = vmatpush.bf16.msra.mxu0 %v2208_v2  ;;  %317 = vmatpush.bf16.msra.mxu1 %v2212_v6  ;;  %v3274_v41 = vld [vmem:[#allocation7 + $0x168] sm:$0xf0]  ;;  %v2724_v42 = vor.u32 %v3337_v39, %v2723_v37  ;;  %v2695_v43 = vld [vmem:[#allocation7 + $0x310] sm:$0xf]  ;;  %v2947_v45 = vld [vmem:[#allocation7 + $0x508] sm:$0xf] }
  0x27   :  { %330 = vmatpush.bf16.msra.mxu2 %v2216_v7  ;;  %v3330_v44 = vld [vmem:[#allocation7 + $0x328] sm:$0xf0]  ;;  %v2472_v46 = vor.u32 %v3274_v41, %v2471_v40  ;;  %v3393_v47 = vld [vmem:[#allocation7 + $0x520] sm:$0xf0]  ;;  %v3171_v48 = vld [vmem:[#allocation7 + $0x6c8] sm:$0xf] }
  0x28   :  { %343 = vmatpush.bf16.msra.mxu3 %v2220_v10  ;;  %v3449_v49 = vld [vmem:[#allocation7 + $0x6e0] sm:$0xf0]  ;;  %v2696_v50 = vor.u32 %v3330_v44, %v2695_v43  ;;  %v2948_v51 = vor.u32 %v3393_v47, %v2947_v45  ;;  %v2443_v53 = vld [vmem:[#allocation7 + $0x118] sm:$0xf]  ;;  %v3267_v54 = vld [vmem:[#allocation7 + $0x130] sm:$0xf0] }
  0x29   :  { %v3172_v52 = vor.u32 %v3449_v49, %v3171_v48  ;;  %v2667_v55 = vld [vmem:[#allocation7 + $0x2d8] sm:$0xf]  ;;  %v3323_v56 = vld [vmem:[#allocation7 + $0x2f0] sm:$0xf0]  ;;  %v2919_v57 = vld [vmem:[#allocation7 + $0x4d0] sm:$0xf]  ;;  %v2444_v62 = vor.u32 %v3267_v54, %v2443_v53 }
  0x2a   :  { %305 = vmatpush.bf16.msra.mxu0 %v2192_v14  ;;  %318 = vmatpush.bf16.msra.mxu1 %v2196_v18  ;;  %v3386_v58 = vld [vmem:[#allocation7 + $0x4e8] sm:$0xf0]  ;;  %v3143_v60 = vld [vmem:[#allocation7 + $0x690] sm:$0xf]  ;;  %v2415_v0 = vld [vmem:[#allocation7 + $0xe0] sm:$0xf]  ;;  %v2668_v2 = vor.u32 %v3323_v56, %v2667_v55 }
  0x2b   :  { %331 = vmatpush.bf16.msra.mxu2 %v2200_v19  ;;  %v2920_v59 = vor.u32 %v3386_v58, %v2919_v57  ;;  %v3442_v61 = vld [vmem:[#allocation7 + $0x6a8] sm:$0xf0]  ;;  %v3260_v1 = vld [vmem:[#allocation7 + $0xf8] sm:$0xf0]  ;;  %v2891_v3 = vld [vmem:[#allocation7 + $0x498] sm:$0xf] }
  0x2c   :  { %344 = vmatpush.bf16.msra.mxu3 %v2204_v22  ;;  %v3144_v63 = vor.u32 %v3442_v61, %v3143_v60  ;;  %v3379_v4 = vld [vmem:[#allocation7 + $0x4b0] sm:$0xf0]  ;;  %v3115_v5 = vld [vmem:[#allocation7 + $0x658] sm:$0xf]  ;;  %v2639_v6 = vld [vmem:[#allocation7 + $0x2a0] sm:$0xf]  ;;  %v2416_v13 = vor.u32 %v3260_v1, %v2415_v0 }
  0x2d   :  { %v3316_v7 = vld [vmem:[#allocation7 + $0x2b8] sm:$0xf0]  ;;  %v3435_v8 = vld [vmem:[#allocation7 + $0x670] sm:$0xf0]  ;;  %v2892_v10 = vor.u32 %v3379_v4, %v2891_v3  ;;  %v2863_v12 = vld [vmem:[#allocation7 + $0x460] sm:$0xf] }
  0x2e   :  { %306 = vmatpush.bf16.msra.mxu0 %v2176_v26  ;;  %319 = vmatpush.bf16.msra.mxu1 %v2180_v30  ;;  %v75_v9 = vld [vmem:[%s3688_s1] sm:$0x3]  ;;  %v3116_v11 = vor.u32 %v3435_v8, %v3115_v5  ;;  %v3372_v14 = vld [vmem:[#allocation7 + $0x478] sm:$0xf0]  ;;  %v3087_v15 = vld [vmem:[#allocation7 + $0x620] sm:$0xf]  ;;  %v2640_v17 = vor.u32 %v3316_v7, %v2639_v6 }
  0x2f   :  { %332 = vmatpush.bf16.msra.mxu2 %v2184_v31  ;;  %v3428_v16 = vld [vmem:[#allocation7 + $0x638] sm:$0xf0]  ;;  %v2387_v18 = vld [vmem:[#allocation7 + $0xa8] sm:$0xf]  ;;  %v3253_v19 = vld [vmem:[#allocation7 + $0xc0] sm:$0xf0]  ;;  %v2864_v24 = vor.u32 %v3372_v14, %v2863_v12 }
  0x30   :  { %345 = vmatpush.bf16.msra.mxu3 %v2188_v34  ;;  %v2611_v21 = vld [vmem:[#allocation7 + $0x268] sm:$0xf]  ;;  %v3309_v22 = vld [vmem:[#allocation7 + $0x280] sm:$0xf0]  ;;  %v82_v23 = vperm.slane %v75_v9, 0  ;;  %v3088_v25 = vor.u32 %v3428_v16, %v3087_v15  ;;  %v2388_v27 = vor.u32 %v3253_v19, %v2387_v18  ;;  %v92_v37 = vperm.slane %v75_v9, 1 }
  0x31   :  { %v2835_v26 = vld [vmem:[#allocation7 + $0x428] sm:$0xf]  ;;  %v3365_v28 = vld [vmem:[#allocation7 + $0x440] sm:$0xf0]  ;;  %v2612_v31 = vor.u32 %v3309_v22, %v2611_v21  ;;  %v2359_v32 = vld [vmem:[#allocation7 + $0x70] sm:$0xf] }
  0x32   :  { %1783 = vmatpush.bf16.msrb.mxu0 %v2500_v38  ;;  %1796 = vmatpush.bf16.msrb.mxu1 %v2724_v42  ;;  %v3059_v29 = vld [vmem:[#allocation7 + $0x5e8] sm:$0xf]  ;;  %v3421_v30 = vld [vmem:[#allocation7 + $0x600] sm:$0xf0]  ;;  %v3246_v33 = vld [vmem:[#allocation7 + $0x88] sm:$0xf0]  ;;  %v2836_v38 = vor.u32 %v3365_v28, %v2835_v26 }
  0x33   :  { %1809 = vmatpush.bf16.msrb.mxu2 %v2948_v51  ;;  %v2583_v34 = vld [vmem:[#allocation7 + $0x230] sm:$0xf]  ;;  %v3302_v35 = vld [vmem:[#allocation7 + $0x248] sm:$0xf0]  ;;  %v3465_v36 = vld [vmem:[#allocation2] ss:$0 sm:$0xff]  ;;  %v3060_v39 = vor.u32 %v3421_v30, %v3059_v29  ;;  %v2360_v42 = vor.u32 %v3246_v33, %v2359_v32 }
  0x34   :  { %1822 = vmatpush.bf16.msrb.mxu3 %v3172_v52  ;;  %v2807_v40 = vld [vmem:[#allocation7 + $0x3f0] sm:$0xf]  ;;  %v3358_v43 = vld [vmem:[#allocation7 + $0x408] sm:$0xf0]  ;;  %v2331_v47 = vld [vmem:[#allocation7 + $0x38] sm:$0xf] }
  0x35   :  { %v3031_v44 = vld [vmem:[#allocation7 + $0x5b0] sm:$0xf]  ;;  %v3414_v45 = vld [vmem:[#allocation7 + $0x5c8] sm:$0xf0]  ;;  %v3239_v48 = vld [vmem:[#allocation7 + $0x50] sm:$0xf0]  ;;  %v2808_v52 = vor.u32 %v3358_v43, %v2807_v40 }
  0x36   :  { %1784 = vmatpush.bf16.msrb.mxu0 %v2472_v46  ;;  %1797 = vmatpush.bf16.msrb.mxu1 %v2696_v50  ;;  %v2584_v46 = vor.u32 %v3302_v35, %v2583_v34  ;;  %v2555_v49 = vld [vmem:[#allocation7 + $0x1f8] sm:$0xf]  ;;  %v3295_v50 = vld [vmem:[#allocation7 + $0x210] sm:$0xf0]  ;;  %v3032_v53 = vor.u32 %v3414_v45, %v3031_v44  ;;  %v2332_v57 = vor.u32 %v3239_v48, %v2331_v47  ;;  %v2527_v1 = vld [vmem:[#allocation7 + $0x1c0] sm:$0xf] }
  0x37   :  { %1810 = vmatpush.bf16.msrb.mxu2 %v2920_v59  ;;  %v2779_v54 = vld [vmem:[#allocation7 + $0x3b8] sm:$0xf]  ;;  %v3351_v58 = vld [vmem:[#allocation7 + $0x3d0] sm:$0xf0]  ;;  %v2556_v61 = vor.u32 %v3295_v50, %v2555_v49  ;;  %v3278_v3 = vld [vmem:[#allocation7 + $0x18c] sm:$0xf] }
  0x38   :  { %1823 = vmatpush.bf16.msrb.mxu3 %v3144_v63  ;;  %v3003_v59 = vld [vmem:[#allocation7 + $0x578] sm:$0xf]  ;;  %v3407_v60 = vld [vmem:[#allocation7 + $0x590] sm:$0xf0]  ;;  %v3232_v63 = vld [vmem:[#allocation7 + $0x18] sm:$0xf0]  ;;  %v2780_v7 = vor.u32 %v3351_v58, %v2779_v54 }
  0x39   :  { %v2501_v4 = vld [vmem:[#allocation7 + $0x1a4] sm:$0xf0]  ;;  %v3334_v5 = vld [vmem:[#allocation7 + $0x34c] sm:$0xf]  ;;  %v3004_v8 = vor.u32 %v3407_v60, %v3003_v59  ;;  %v2975_v12 = vld [vmem:[#allocation7 + $0x540] sm:$0xf] }
  0x3a   :  { %1785 = vmatpush.bf16.msrb.mxu0 %v2444_v62  ;;  %1798 = vmatpush.bf16.msrb.mxu1 %v2668_v2  ;;  %v2303_v62 = vld [vmem:[#allocation7] sm:$0xf]  ;;  %v3288_v2 = vld [vmem:[#allocation7 + $0x1d8] sm:$0xf0]  ;;  %v2725_v6 = vld [vmem:[#allocation7 + $0x364] sm:$0xf0]  ;;  %v2504_v21 = vor.u32 %v3278_v3, %v2501_v4 }
  0x3b   :  { %1811 = vmatpush.bf16.msrb.mxu2 %v2892_v10  ;;  %v2751_v10 = vld [vmem:[#allocation7 + $0x380] sm:$0xf]  ;;  %v3390_v14 = vld [vmem:[#allocation7 + $0x50c] sm:$0xf]  ;;  %v2304_v16 = vor.u32 %v3232_v63, %v2303_v62  ;;  %v2949_v18 = vld [vmem:[#allocation7 + $0x524] sm:$0xf0]  ;;  %v2728_v22 = vor.u32 %v3334_v5, %v2725_v6 }
  0x3c   :  { %1824 = vmatpush.bf16.msrb.mxu3 %v3116_v11  ;;  %v3344_v11 = vld [vmem:[#allocation7 + $0x398] sm:$0xf0]  ;;  %v3446_v19 = vld [vmem:[#allocation7 + $0x6cc] sm:$0xf]  ;;  %v2697_v26 = vld [vmem:[#allocation7 + $0x32c] sm:$0xf0]  ;;  %v2952_v29 = vor.u32 %v3390_v14, %v2949_v18 }
  0x3d   :  { %v2921_v32 = vld [vmem:[#allocation7 + $0x4ec] sm:$0xf0]  ;;  %v3439_v33 = vld [vmem:[#allocation7 + $0x694] sm:$0xf]  ;;  %v2669_v40 = vld [vmem:[#allocation7 + $0x2f4] sm:$0xf0] }
  0x3e   :  { %1786 = vmatpush.bf16.msrb.mxu0 %v2416_v13  ;;  %1799 = vmatpush.bf16.msrb.mxu1 %v2640_v17  ;;  %v3400_v13 = vld [vmem:[#allocation7 + $0x558] sm:$0xf0]  ;;  %v2528_v17 = vor.u32 %v3288_v2, %v2527_v1  ;;  %v3145_v34 = vld [vmem:[#allocation7 + $0x6ac] sm:$0xf0]  ;;  %v2893_v44 = vld [vmem:[#allocation7 + $0x4b4] sm:$0xf0] }
  0x3f   :  { %1812 = vmatpush.bf16.msrb.mxu2 %v2864_v24  ;;  %v2473_v24 = vld [vmem:[#allocation7 + $0x16c] sm:$0xf0]  ;;  %v2976_v28 = vor.u32 %v3400_v13, %v2975_v12  ;;  %v3376_v43 = vld [vmem:[#allocation7 + $0x49c] sm:$0xf]  ;;  %v3257_v49 = vld [vmem:[#allocation7 + $0xe4] sm:$0xf] }
  0x40   :  { %1825 = vmatpush.bf16.msrb.mxu3 %v3088_v25  ;;  %v3327_v25 = vld [vmem:[#allocation7 + $0x314] sm:$0xf]  ;;  %v3432_v45 = vld [vmem:[#allocation7 + $0x65c] sm:$0xf]  ;;  %v2417_v50 = vld [vmem:[#allocation7 + $0xfc] sm:$0xf0] }
  0x41   :  { %v3089_v58 = vld [vmem:[#allocation7 + $0x63c] sm:$0xf0]  ;;  %v2420_v59 = vor.u32 %v3257_v49, %v2417_v50  ;;  %v2389_v62 = vld [vmem:[#allocation7 + $0xc4] sm:$0xf0]  ;;  %v3306_v63 = vld [vmem:[#allocation7 + $0x26c] sm:$0xf] }
  0x42   :  { %1787 = vmatpush.bf16.msrb.mxu0 %v2388_v27  ;;  %1800 = vmatpush.bf16.msrb.mxu1 %v2612_v31  ;;  %v2752_v27 = vor.u32 %v3344_v11, %v2751_v10  ;;  %v3383_v31 = vld [vmem:[#allocation7 + $0x4d4] sm:$0xf]  ;;  %v2361_v6 = vld [vmem:[#allocation7 + $0x8c] sm:$0xf0]  ;;  %v3362_v11 = vld [vmem:[#allocation7 + $0x42c] sm:$0xf] }
  0x43   :  { %1813 = vmatpush.bf16.msrb.mxu2 %v2836_v38  ;;  %v2445_v38 = vld [vmem:[#allocation7 + $0x134] sm:$0xf0]  ;;  %v3243_v5 = vld [vmem:[#allocation7 + $0x74] sm:$0xf]  ;;  %v2837_v12 = vld [vmem:[#allocation7 + $0x444] sm:$0xf0] }
  0x44   :  { %1826 = vmatpush.bf16.msrb.mxu3 %v3060_v39  ;;  %v3320_v39 = vld [vmem:[#allocation7 + $0x2dc] sm:$0xf]  ;;  %v3418_v13 = vld [vmem:[#allocation7 + $0x5ec] sm:$0xf]  ;;  %v2840_v14 = vor.u32 %v3362_v11, %v2837_v12  ;;  %v2333_v18 = vld [vmem:[#allocation7 + $0x54] sm:$0xf0] }
  0x45   :  { %v2672_v48 = vor.u32 %v3320_v39, %v2669_v40  ;;  %v3005_v39 = vld [vmem:[#allocation7 + $0x594] sm:$0xf0]  ;;  %v3179_v11 = vld [vmem:[#allocation7 + $0x6d0] sm:$0xf]  ;;  %vm2153_vm0 = vcmask 130048  }
  0x46   :  { %1788 = vmatpush.bf16.msrb.mxu0 %v2360_v42  ;;  %1801 = vmatpush.bf16.msrb.mxu1 %v2584_v46  ;;  %v3148_v42 = vor.u32 %v3439_v33, %v3145_v34  ;;  %v3117_v46 = vld [vmem:[#allocation7 + $0x674] sm:$0xf0]  ;;  %v2529_v33 = vld [vmem:[#allocation7 + $0x1dc] sm:$0xf0] }
  0x47   :  { %1814 = vmatpush.bf16.msrb.mxu2 %v2808_v52  ;;  %v2641_v52 = vld [vmem:[#allocation7 + $0x2bc] sm:$0xf0]  ;;  %v3120_v54 = vor.u32 %v3432_v45, %v3117_v46 }
  0x48   :  { %1827 = vmatpush.bf16.msrb.mxu3 %v3032_v53  ;;  %v2896_v53 = vor.u32 %v3376_v43, %v2893_v44  ;;  %v3397_v44 = vld [vmem:[#allocation7 + $0x544] sm:$0xf]  ;;  %v2977_v45 = vld [vmem:[#allocation7 + $0x55c] sm:$0xf0] }
  0x49   :  { %v2980_v46 = vor.u32 %v3397_v44, %v2977_v45  ;;  %v3380_v45 = vld [vmem:[#allocation7 + $0x4b8] sm:$0xf0] }
  0x4a   :  { %1789 = vmatpush.bf16.msrb.mxu0 %v2332_v57  ;;  %1802 = vmatpush.bf16.msrb.mxu1 %v2556_v61  ;;  %v3425_v57 = vld [vmem:[#allocation7 + $0x624] sm:$0xf]  ;;  %v3250_v61 = vld [vmem:[#allocation7 + $0xac] sm:$0xf] }
  0x4b   :  { %1815 = vmatpush.bf16.msrb.mxu2 %v2780_v7  ;;  %v3092_v2 = vor.u32 %v3425_v57, %v3089_v58  ;;  %v2392_v3 = vor.u32 %v3250_v61, %v2389_v62  ;;  %v3299_v7 = vld [vmem:[#allocation7 + $0x234] sm:$0xf]  ;;  %v3338_v57 = vld [vmem:[#allocation7 + $0x368] sm:$0xf0] }
  0x4c   :  { %1828 = vmatpush.bf16.msrb.mxu3 %v3004_v8  ;;  %v2585_v8 = vld [vmem:[#allocation7 + $0x24c] sm:$0xf0] }
  0x4d   :  { %v2588_v10 = vor.u32 %v3299_v7, %v2585_v8 }
  0x4e   :  { %1790 = vmatpush.bf16.msrb.mxu0 %v2304_v16  ;;  %1803 = vmatpush.bf16.msrb.mxu1 %v2528_v17  ;;  %v3236_v17 = vld [vmem:[#allocation7 + $0x3c] sm:$0xf] }
  0x4f   :  { %1816 = vmatpush.bf16.msrb.mxu2 %v2752_v27  ;;  %v3033_v27 = vld [vmem:[#allocation7 + $0x5cc] sm:$0xf0] }
  0x50   :  { %1829 = vmatpush.bf16.msrb.mxu3 %v2976_v28 }
  0x82   :  { %v80_v20 = vpop.permute.xlu0 %79 }
  0x83   :  { %v83_v41 = vmul.f32 %v82_v23, %v80_v20  ;;  %v3173_v20 = vld [vmem:[#allocation7 + $0x6e4] sm:$0xf0]  ;;  %v3271_v23 = vld [vmem:[#allocation7 + $0x154] sm:$0xf] }
  0x84   :  { %v3176_v30 = vor.u32 %v3446_v19, %v3173_v20  ;;  %v2476_v35 = vor.u32 %v3271_v23, %v2473_v24  ;;  %v2336_v19 = vor.u32 %v3236_v17, %v2333_v18  ;;  %v3292_v20 = vld [vmem:[#allocation7 + $0x1fc] sm:$0xf]  ;;  %v3355_v23 = vld [vmem:[#allocation7 + $0x3f4] sm:$0xf]  ;;  %v2809_v24 = vld [vmem:[#allocation7 + $0x40c] sm:$0xf0] }
  0x85   :  { %v87_v55 = vadd.f32 %v3465_v36, %v83_v41  ;;  %v2700_v36 = vor.u32 %v3327_v25, %v2697_v26  ;;  %v2924_v41 = vor.u32 %v3383_v31, %v2921_v32  ;;  %v3411_v25 = vld [vmem:[#allocation7 + $0x5b4] sm:$0xf]  ;;  %v2812_v26 = vor.u32 %v3355_v23, %v2809_v24  ;;  %v3285_v31 = vld [vmem:[#allocation7 + $0x1c4] sm:$0xf]  ;;  %v3450_v17 = vld [vmem:[#allocation7 + $0x6e8] sm:$0xf0] }
  0x86   :  { %v3036_v28 = vor.u32 %v3411_v25, %v3033_v27  ;;  %v2532_v34 = vor.u32 %v3285_v31, %v2529_v33  ;;  %v2451_v18 = vld [vmem:[#allocation7 + $0x120] sm:$0xf]  ;;  %v3180_v25 = vor.u32 %v3450_v17, %v3179_v11  ;;  %v2927_v27 = vld [vmem:[#allocation7 + $0x4d8] sm:$0xf]  ;;  %v3443_v33 = vld [vmem:[#allocation7 + $0x6b0] sm:$0xf0] }
  0x87   :  { %v3240_v11 = vld [vmem:[#allocation7 + $0x58] sm:$0xf0]  ;;  %v3359_v17 = vld [vmem:[#allocation7 + $0x410] sm:$0xf0] }
  0x8b   :  { %v90_v51 = vpop.permute.xlu0 %89 }
  0x8c   :  { %v93_v56 = vmul.f32 %v92_v37, %v90_v51  ;;  %v3264_v37 = vld [vmem:[#allocation7 + $0x11c] sm:$0xf]  ;;  %v3313_v51 = vld [vmem:[#allocation7 + $0x2a4] sm:$0xf] }
  0x8d   :  { %v2448_v47 = vor.u32 %v3264_v37, %v2445_v38  ;;  %v2644_v60 = vor.u32 %v3313_v51, %v2641_v52  ;;  %v3404_v38 = vld [vmem:[#allocation7 + $0x57c] sm:$0xf]  ;;  %v2507_v52 = vld [vmem:[#allocation7 + $0x190] sm:$0xf] }
  0x8e   :  { %v94_v0 = vadd.f32 %v93_v56, %v87_v55  ;;  %v3369_v55 = vld [vmem:[#allocation7 + $0x464] sm:$0xf]  ;;  %v2865_v56 = vld [vmem:[#allocation7 + $0x47c] sm:$0xf0]  ;;  %v3008_v40 = vor.u32 %v3404_v38, %v3005_v39 }
  0x8f   :  { %v2868_v1 = vor.u32 %v3369_v55, %v2865_v56  ;;  %v3282_v55 = vld [vmem:[#allocation7 + $0x1a8] sm:$0xf0]  ;;  %v2731_v56 = vld [vmem:[#allocation7 + $0x350] sm:$0xf] }
  0x90   :  { %v95_v9 = vmax.f32 %v94_v0, 0.0  ;;  %v2613_v0 = vld [vmem:[#allocation7 + $0x284] sm:$0xf0]  ;;  %v2508_v62 = vor.u32 %v3282_v55, %v2507_v52  ;;  %v3373_v55 = vld [vmem:[#allocation7 + $0x480] sm:$0xf0] }
  0x91   :  { %v2616_v4 = vor.u32 %v3306_v63, %v2613_v0  ;;  %v2732_v63 = vor.u32 %v3338_v57, %v2731_v56  ;;  %v2479_v0 = vld [vmem:[#allocation7 + $0x158] sm:$0xf]  ;;  %v3095_v56 = vld [vmem:[#allocation7 + $0x628] sm:$0xf]  ;;  %v3429_v57 = vld [vmem:[#allocation7 + $0x640] sm:$0xf0] }
  0x92   :  { %v96_v15 = vpack.c.bf16 %v95_v9, %v95_v9  ;;  %v2364_v9 = vor.u32 %v3243_v5, %v2361_v6  ;;  %v3331_v5 = vld [vmem:[#allocation7 + $0x330] sm:$0xf0] }
  0x94   :  { %307 = vmatmul.bf16.vlgmr.msra.gmra.mxu0 %v96_v15  ;;  %320 = vmatmul.bf16.vlgmr.msra.gmra.mxu1 %v96_v15 }
  0x95   :  { %333 = vmatmul.bf16.vlgmr.msra.gmra.mxu2 %v96_v15  ;;  %346 = vmatmul.bf16.vlgmr.msra.gmra.mxu3 %v96_v15  ;;  %v3061_v15 = vld [vmem:[#allocation7 + $0x604] sm:$0xf0] }
  0x96   :  { %1835 = vmatpush.bf16.msra.mxu0 %v2504_v21  ;;  %1848 = vmatpush.bf16.msra.mxu1 %v2728_v22  ;;  %v3064_v16 = vor.u32 %v3418_v13, %v3061_v15  ;;  %v2557_v21 = vld [vmem:[#allocation7 + $0x214] sm:$0xf0] }
  0x97   :  { %1861 = vmatpush.bf16.msra.mxu2 %v2952_v29  ;;  %1874 = vmatpush.bf16.msra.mxu3 %v3176_v30  ;;  %v2560_v22 = vor.u32 %v3292_v20, %v2557_v21  ;;  %v3229_v29 = vld [vmem:[#allocation7 + $0x4] sm:$0xf]  ;;  %v2305_v30 = vld [vmem:[#allocation7 + $0x1c] sm:$0xf0]  ;;  %v3324_v21 = vld [vmem:[#allocation7 + $0x2f8] sm:$0xf0] }
  0x98   :  { %v2308_v32 = vor.u32 %v3229_v29, %v2305_v30  ;;  %v2675_v20 = vld [vmem:[#allocation7 + $0x2e0] sm:$0xf] }
  0x99   :  { %v2676_v31 = vor.u32 %v3324_v21, %v2675_v20 }
  0x9a   :  { %1836 = vmatpush.bf16.msra.mxu0 %v2476_v35  ;;  %1849 = vmatpush.bf16.msra.mxu1 %v2700_v36  ;;  %v3348_v35 = vld [vmem:[#allocation7 + $0x3bc] sm:$0xf]  ;;  %v2781_v36 = vld [vmem:[#allocation7 + $0x3d4] sm:$0xf0] }
  0x9b   :  { %1862 = vmatpush.bf16.msra.mxu2 %v2924_v41  ;;  %1875 = vmatpush.bf16.msra.mxu3 %v3148_v42  ;;  %v2784_v37 = vor.u32 %v3348_v35, %v2781_v36  ;;  %v3341_v41 = vld [vmem:[#allocation7 + $0x384] sm:$0xf]  ;;  %v2753_v42 = vld [vmem:[#allocation7 + $0x39c] sm:$0xf0]  ;;  %v2647_v36 = vld [vmem:[#allocation7 + $0x2a8] sm:$0xf] }
  0x9c   :  { %v2756_v43 = vor.u32 %v3341_v41, %v2753_v42  ;;  %v3261_v35 = vld [vmem:[#allocation7 + $0x100] sm:$0xf0]  ;;  %v2899_v42 = vld [vmem:[#allocation7 + $0x4a0] sm:$0xf] }
  0x9d   :  { %v2900_v52 = vor.u32 %v3380_v45, %v2899_v42  ;;  %v3272_v42 = vld [vmem:[#allocation7 + $0x15c] sm:$0xf] }
  0x9e   :  { %1837 = vmatpush.bf16.msra.mxu0 %v2448_v47  ;;  %1850 = vmatpush.bf16.msra.mxu1 %v2672_v48  ;;  %v129_v47 = vld [vmem:[%s3691_s4] sm:$0xf] }
  0x9f   :  { %1863 = vmatpush.bf16.msra.mxu2 %v2896_v53  ;;  %1876 = vmatpush.bf16.msra.mxu3 %v3120_v54  ;;  %v131_v48 = vperm.slane %v129_v47, 0  ;;  %v132_v49 = vperm.slane %v129_v47, 1  ;;  %v134_v61 = vperm.slane %v129_v47, 3 }
  0xa2   :  { %1838 = vmatpush.bf16.msra.mxu0 %v2420_v59  ;;  %1851 = vmatpush.bf16.msra.mxu1 %v2644_v60  ;;  %v133_v60 = vperm.slane %v129_v47, 2  ;;  %v3436_v47 = vld [vmem:[#allocation7 + $0x678] sm:$0xf0] }
  0xa3   :  { %1864 = vmatpush.bf16.msra.mxu2 %v2868_v1  ;;  %1877 = vmatpush.bf16.msra.mxu3 %v3092_v2  ;;  %v3275_v1 = vld [vmem:[#allocation7 + $0x170] sm:$0xf0] }
  0xa4   :  { %v2480_v8 = vor.u32 %v3275_v1, %v2479_v0  ;;  %v3096_v1 = vor.u32 %v3429_v57, %v3095_v56 }
  0xa6   :  { %1839 = vmatpush.bf16.msra.mxu0 %v2392_v3  ;;  %1852 = vmatpush.bf16.msra.mxu1 %v2616_v4  ;;  %v2703_v4 = vld [vmem:[#allocation7 + $0x318] sm:$0xf] }
  0xa7   :  { %1865 = vmatpush.bf16.msra.mxu2 %v2840_v14  ;;  %1878 = vmatpush.bf16.msra.mxu3 %v3064_v16  ;;  %v2704_v16 = vor.u32 %v3331_v5, %v2703_v4  ;;  %v2843_v4 = vld [vmem:[#allocation7 + $0x430] sm:$0xf]  ;;  %v3366_v5 = vld [vmem:[#allocation7 + $0x448] sm:$0xf0] }
  0xaa   :  { %1840 = vmatpush.bf16.msra.mxu0 %v2364_v9  ;;  %1853 = vmatpush.bf16.msra.mxu1 %v2588_v10  ;;  %v2955_v9 = vld [vmem:[#allocation7 + $0x510] sm:$0xf]  ;;  %v3394_v10 = vld [vmem:[#allocation7 + $0x528] sm:$0xf0] }
  0xab   :  { %1866 = vmatpush.bf16.msra.mxu2 %v2812_v26  ;;  %1879 = vmatpush.bf16.msra.mxu3 %v3036_v28  ;;  %v2956_v24 = vor.u32 %v3394_v10, %v2955_v9  ;;  %v3387_v28 = vld [vmem:[#allocation7 + $0x4f0] sm:$0xf0]  ;;  %v2339_v10 = vld [vmem:[#allocation7 + $0x40] sm:$0xf] }
  0xac   :  { %v2340_v20 = vor.u32 %v3240_v11, %v2339_v10  ;;  %v3258_v10 = vld [vmem:[#allocation7 + $0xec] sm:$0xf]  ;;  %v2425_v11 = vld [vmem:[#allocation7 + $0x104] sm:$0xf0] }
  0xae   :  { %1841 = vmatpush.bf16.msra.mxu0 %v2336_v19  ;;  %1854 = vmatpush.bf16.msra.mxu1 %v2560_v22  ;;  %v3268_v19 = vld [vmem:[#allocation7 + $0x138] sm:$0xf0] }
  0xaf   :  { %1867 = vmatpush.bf16.msra.mxu2 %v2784_v37  ;;  %1880 = vmatpush.bf16.msra.mxu3 %v3008_v40  ;;  %v2452_v26 = vor.u32 %v3268_v19, %v2451_v18  ;;  %v3317_v37 = vld [vmem:[#allocation7 + $0x2c0] sm:$0xf0]  ;;  %v2928_v40 = vor.u32 %v3387_v28, %v2927_v27  ;;  %v3039_v18 = vld [vmem:[#allocation7 + $0x5b8] sm:$0xf]  ;;  %v3415_v19 = vld [vmem:[#allocation7 + $0x5d0] sm:$0xf0] }
  0xb0   :  { %v2648_v44 = vor.u32 %v3317_v37, %v2647_v36  ;;  %v2509_v27 = vld [vmem:[#allocation7 + $0x1ac] sm:$0xf0]  ;;  %v3011_v36 = vld [vmem:[#allocation7 + $0x580] sm:$0xf]  ;;  %v3408_v37 = vld [vmem:[#allocation7 + $0x598] sm:$0xf0] }
  0xb2   :  { %1842 = vmatpush.bf16.msra.mxu0 %v2308_v32  ;;  %1855 = vmatpush.bf16.msra.mxu1 %v2532_v34  ;;  %v3151_v32 = vld [vmem:[#allocation7 + $0x698] sm:$0xf]  ;;  %v2423_v34 = vld [vmem:[#allocation7 + $0xe8] sm:$0xf] }
  0xb3   :  { %1868 = vmatpush.bf16.msra.mxu2 %v2756_v43  ;;  %1881 = vmatpush.bf16.msra.mxu3 %v2980_v46  ;;  %v3152_v41 = vor.u32 %v3443_v33, %v3151_v32  ;;  %v2424_v43 = vor.u32 %v3261_v35, %v2423_v34  ;;  %v3123_v46 = vld [vmem:[#allocation7 + $0x660] sm:$0xf]  ;;  %v3335_v32 = vld [vmem:[#allocation7 + $0x354] sm:$0xf]  ;;  %v2733_v33 = vld [vmem:[#allocation7 + $0x36c] sm:$0xf0] }
  0xb4   :  { %v2787_v34 = vld [vmem:[#allocation7 + $0x3c0] sm:$0xf]  ;;  %v3352_v35 = vld [vmem:[#allocation7 + $0x3d8] sm:$0xf0] }
  0xb5   :  { %v2788_v45 = vor.u32 %v3352_v35, %v2787_v34 }
 0x111   :  { %v308_v50 = vpop.f32.mrf.mxu0  ;;  %v321_v51 = vpop.f32.mrf.mxu1 }
 0x112   :  { %v309_v53 = vadd.f32 %v308_v50, %v131_v48  ;;  %v322_v54 = vadd.f32 %v321_v51, %v132_v49  ;;  %v2395_v48 = vld [vmem:[#allocation7 + $0xb0] sm:$0xf]  ;;  %v3254_v49 = vld [vmem:[#allocation7 + $0xc8] sm:$0xf0] }
 0x113   :  { %v2619_v50 = vld [vmem:[#allocation7 + $0x270] sm:$0xf]  ;;  %v3310_v51 = vld [vmem:[#allocation7 + $0x288] sm:$0xf0] }
 0x114   :  { %v351_v58 = vmax.f32 %v309_v53, 0.0  ;;  %v352_v59 = vmax.f32 %v322_v54, 0.0  ;;  %v3124_v53 = vor.u32 %v3436_v47, %v3123_v46  ;;  %v2871_v54 = vld [vmem:[#allocation7 + $0x468] sm:$0xf]  ;;  %v3012_v46 = vor.u32 %v3408_v37, %v3011_v36  ;;  %v2705_v47 = vld [vmem:[#allocation7 + $0x334] sm:$0xf0] }
 0x115   :  { %v2872_v0 = vor.u32 %v3373_v55, %v2871_v54  ;;  %v3447_v54 = vld [vmem:[#allocation7 + $0x6d4] sm:$0xf]  ;;  %v3181_v55 = vld [vmem:[#allocation7 + $0x6ec] sm:$0xf0]  ;;  %v3244_v36 = vld [vmem:[#allocation7 + $0x7c] sm:$0xf] }
 0x116   :  { %v3636_v2 = vpack.c.bf16 %v351_v58, %v351_v58  ;;  %v3638_v3 = vpack.c.bf16 %v352_v59, %v352_v59  ;;  %v2396_v58 = vor.u32 %v3254_v49, %v2395_v48  ;;  %v2620_v59 = vor.u32 %v3310_v51, %v2619_v50  ;;  %v2759_v48 = vld [vmem:[#allocation7 + $0x388] sm:$0xf]  ;;  %v3345_v49 = vld [vmem:[#allocation7 + $0x3a0] sm:$0xf0]  ;;  %v2369_v37 = vld [vmem:[#allocation7 + $0x94] sm:$0xf0] }
 0x117   :  { %v2983_v50 = vld [vmem:[#allocation7 + $0x548] sm:$0xf]  ;;  %v3401_v51 = vld [vmem:[#allocation7 + $0x560] sm:$0xf0] }
 0x118   :  { %v334_v6 = vpop.f32.mrf.mxu2  ;;  %v347_v7 = vpop.f32.mrf.mxu3  ;;  %1791 = vmatmul.bf16.vlgmr.msrb.gmra.mxu0 %v3636_v2  ;;  %1804 = vmatmul.bf16.vlgmr.msrb.gmra.mxu1 %v3638_v3 }
 0x119   :  { %v335_v12 = vadd.f32 %v334_v6, %v133_v60  ;;  %v348_v13 = vadd.f32 %v347_v7, %v134_v61  ;;  %1887 = vmatpush.bf16.msrb.mxu0 %v2508_v62  ;;  %1900 = vmatpush.bf16.msrb.mxu1 %v2732_v63  ;;  %v310_v14 = vpop.f32.mrf.mxu0  ;;  %v323_v15 = vpop.f32.mrf.mxu1  ;;  %v2367_v60 = vld [vmem:[#allocation7 + $0x78] sm:$0xf]  ;;  %v3247_v61 = vld [vmem:[#allocation7 + $0x90] sm:$0xf0]  ;;  %v3067_v6 = vld [vmem:[#allocation7 + $0x5f0] sm:$0xf] }
 0x11a   :  { %v2591_v62 = vld [vmem:[#allocation7 + $0x238] sm:$0xf]  ;;  %v3303_v63 = vld [vmem:[#allocation7 + $0x250] sm:$0xf0]  ;;  %v3422_v7 = vld [vmem:[#allocation7 + $0x608] sm:$0xf0]  ;;  %v2844_v14 = vor.u32 %v3366_v5, %v2843_v4 }
 0x11b   :  { %v353_v22 = vmax.f32 %v335_v12, 0.0  ;;  %v354_v23 = vmax.f32 %v348_v13, 0.0  ;;  %v2592_v9 = vor.u32 %v3303_v63, %v2591_v62  ;;  %v2563_v12 = vld [vmem:[#allocation7 + $0x200] sm:$0xf]  ;;  %v3296_v13 = vld [vmem:[#allocation7 + $0x218] sm:$0xf0]  ;;  %v3068_v15 = vor.u32 %v3422_v7, %v3067_v6 }
 0x11c   :  { %v2564_v21 = vor.u32 %v3296_v13, %v2563_v12  ;;  %v3321_v62 = vld [vmem:[#allocation7 + $0x2e4] sm:$0xf]  ;;  %v2677_v63 = vld [vmem:[#allocation7 + $0x2fc] sm:$0xf0]  ;;  %v3384_v4 = vld [vmem:[#allocation7 + $0x4dc] sm:$0xf] }
 0x11d   :  { %v3642_v29 = vpack.c.bf16 %v353_v22, %v353_v22  ;;  %v3644_v30 = vpack.c.bf16 %v354_v23, %v354_v23  ;;  %1888 = vmatpush.bf16.msrb.mxu0 %v2480_v8  ;;  %1901 = vmatpush.bf16.msrb.mxu1 %v2704_v16  ;;  %v2368_v8 = vor.u32 %v3247_v61, %v2367_v60  ;;  %v2815_v16 = vld [vmem:[#allocation7 + $0x3f8] sm:$0xf]  ;;  %v2311_v22 = vld [vmem:[#allocation7 + $0x8] sm:$0xf]  ;;  %v3233_v23 = vld [vmem:[#allocation7 + $0x20] sm:$0xf0] }
 0x11e   :  { %v2816_v28 = vor.u32 %v3359_v17, %v2815_v16  ;;  %v2984_v60 = vor.u32 %v3401_v51, %v2983_v50  ;;  %v2453_v61 = vld [vmem:[#allocation7 + $0x13c] sm:$0xf0]  ;;  %v2929_v5 = vld [vmem:[#allocation7 + $0x4f4] sm:$0xf0]  ;;  %v3440_v6 = vld [vmem:[#allocation7 + $0x69c] sm:$0xf] }
 0x11f   :  { %1817 = vmatmul.bf16.vlgmr.msrb.gmra.mxu2 %v3642_v29  ;;  %1830 = vmatmul.bf16.vlgmr.msrb.gmra.mxu3 %v3644_v30  ;;  %v3153_v7 = vld [vmem:[#allocation7 + $0x6b4] sm:$0xf0]  ;;  %v3314_v12 = vld [vmem:[#allocation7 + $0x2ac] sm:$0xf]  ;;  %v2649_v13 = vld [vmem:[#allocation7 + $0x2c4] sm:$0xf0] }
 0x120   :  { %1913 = vmatpush.bf16.msrb.mxu2 %v2956_v24  ;;  %1926 = vmatpush.bf16.msrb.mxu3 %v3180_v25  ;;  %v336_v38 = vpop.f32.mrf.mxu2  ;;  %v349_v39 = vpop.f32.mrf.mxu3  ;;  %v2535_v24 = vld [vmem:[#allocation7 + $0x1c8] sm:$0xf]  ;;  %v3289_v25 = vld [vmem:[#allocation7 + $0x1e0] sm:$0xf0]  ;;  %v2901_v17 = vld [vmem:[#allocation7 + $0x4bc] sm:$0xf0] }
 0x121   :  { %1889 = vmatpush.bf16.msrb.mxu0 %v2452_v26  ;;  %1902 = vmatpush.bf16.msrb.mxu1 %v2676_v31  ;;  %v3279_v26 = vld [vmem:[#allocation7 + $0x194] sm:$0xf]  ;;  %v3040_v31 = vor.u32 %v3415_v19, %v3039_v18  ;;  %v2312_v38 = vor.u32 %v3233_v23, %v2311_v22  ;;  %v2536_v39 = vor.u32 %v3289_v25, %v2535_v24  ;;  %v3377_v16 = vld [vmem:[#allocation7 + $0x4a4] sm:$0xf]  ;;  %v3125_v19 = vld [vmem:[#allocation7 + $0x67c] sm:$0xf0] }
 0x122   :  { %v3433_v18 = vld [vmem:[#allocation7 + $0x664] sm:$0xf]  ;;  %v3251_v22 = vld [vmem:[#allocation7 + $0xb4] sm:$0xf]  ;;  %v2397_v23 = vld [vmem:[#allocation7 + $0xcc] sm:$0xf0] }
 0x123   :  { %v3307_v24 = vld [vmem:[#allocation7 + $0x274] sm:$0xf]  ;;  %v2621_v25 = vld [vmem:[#allocation7 + $0x28c] sm:$0xf0]  ;;  %v2400_v34 = vor.u32 %v3251_v22, %v2397_v23  ;;  %v3293_v50 = vld [vmem:[#allocation7 + $0x204] sm:$0xf] }
 0x124   :  { %1914 = vmatpush.bf16.msrb.mxu2 %v2928_v40  ;;  %1927 = vmatpush.bf16.msrb.mxu3 %v3152_v41  ;;  %v2512_v40 = vor.u32 %v3279_v26, %v2509_v27  ;;  %v2736_v41 = vor.u32 %v3335_v32, %v2733_v33  ;;  %v2904_v26 = vor.u32 %v3377_v16, %v2901_v17  ;;  %v3426_v32 = vld [vmem:[#allocation7 + $0x62c] sm:$0xf]  ;;  %v3097_v33 = vld [vmem:[#allocation7 + $0x644] sm:$0xf0]  ;;  %v2565_v51 = vld [vmem:[#allocation7 + $0x21c] sm:$0xf0] }
 0x125   :  { %1890 = vmatpush.bf16.msrb.mxu0 %v2424_v43  ;;  %1903 = vmatpush.bf16.msrb.mxu1 %v2648_v44  ;;  %v2481_v43 = vld [vmem:[#allocation7 + $0x174] sm:$0xf0]  ;;  %v3328_v44 = vld [vmem:[#allocation7 + $0x31c] sm:$0xf]  ;;  %v3128_v27 = vor.u32 %v3433_v18, %v3125_v19  ;;  %v2624_v35 = vor.u32 %v3307_v24, %v2621_v25  ;;  %v2487_v16 = vld [vmem:[#allocation7 + $0x160] sm:$0xf] }
 0x126   :  { %v2484_v56 = vor.u32 %v3272_v42, %v2481_v43  ;;  %v2708_v57 = vor.u32 %v3328_v44, %v2705_v47  ;;  %v3363_v42 = vld [vmem:[#allocation7 + $0x434] sm:$0xf]  ;;  %v2845_v43 = vld [vmem:[#allocation7 + $0x44c] sm:$0xf0]  ;;  %v3276_v17 = vld [vmem:[#allocation7 + $0x178] sm:$0xf0] }
 0x127   :  { %v3419_v44 = vld [vmem:[#allocation7 + $0x5f4] sm:$0xf]  ;;  %v2711_v18 = vld [vmem:[#allocation7 + $0x320] sm:$0xf]  ;;  %v3342_v22 = vld [vmem:[#allocation7 + $0x38c] sm:$0xf] }
 0x128   :  { %1915 = vmatpush.bf16.msrb.mxu2 %v2900_v52  ;;  %1928 = vmatpush.bf16.msrb.mxu3 %v3124_v53  ;;  %v3391_v52 = vld [vmem:[#allocation7 + $0x514] sm:$0xf]  ;;  %v2957_v53 = vld [vmem:[#allocation7 + $0x52c] sm:$0xf0]  ;;  %v2761_v23 = vld [vmem:[#allocation7 + $0x3a4] sm:$0xf0] }
 0x129   :  { %1843 = vmatmul.bf16.vlgmr.msra.gmra.mxu0 %v3636_v2  ;;  %1856 = vmatmul.bf16.vlgmr.msra.gmra.mxu1 %v3638_v3  ;;  %v3398_v24 = vld [vmem:[#allocation7 + $0x54c] sm:$0xf]  ;;  %v2985_v25 = vld [vmem:[#allocation7 + $0x564] sm:$0xf0] }
 0x12a   :  { %1891 = vmatpush.bf16.msrb.mxu0 %v2396_v58  ;;  %1904 = vmatpush.bf16.msrb.mxu1 %v2620_v59  ;;  %v3265_v58 = vld [vmem:[#allocation7 + $0x124] sm:$0xf]  ;;  %v2760_v59 = vor.u32 %v3345_v49, %v2759_v48  ;;  %v2341_v49 = vld [vmem:[#allocation7 + $0x5c] sm:$0xf0] }
 0x12b   :  { %v3237_v48 = vld [vmem:[#allocation7 + $0x44] sm:$0xf] }
 0x12c   :  { %1916 = vmatpush.bf16.msrb.mxu2 %v2872_v0  ;;  %1929 = vmatpush.bf16.msrb.mxu3 %v3096_v1  ;;  %v2960_v0 = vor.u32 %v3391_v52, %v2957_v53  ;;  %v3184_v1 = vor.u32 %v3447_v54, %v3181_v55  ;;  %v2848_v52 = vor.u32 %v3363_v42, %v2845_v43  ;;  %v3356_v54 = vld [vmem:[#allocation7 + $0x3fc] sm:$0xf]  ;;  %v2817_v55 = vld [vmem:[#allocation7 + $0x414] sm:$0xf0]  ;;  %v2935_v42 = vld [vmem:[#allocation7 + $0x4e0] sm:$0xf] }
 0x12d   :  { %v3388_v43 = vld [vmem:[#allocation7 + $0x4f8] sm:$0xf0] }
 0x12e   :  { %1892 = vmatpush.bf16.msrb.mxu0 %v2368_v8  ;;  %1905 = vmatpush.bf16.msrb.mxu1 %v2592_v9  ;;  %v2456_v8 = vor.u32 %v3265_v58, %v2453_v61  ;;  %v2680_v9 = vor.u32 %v3321_v62, %v2677_v63  ;;  %v2344_v58 = vor.u32 %v3237_v48, %v2341_v49  ;;  %v2313_v61 = vld [vmem:[#allocation7 + $0x24] sm:$0xf0]  ;;  %v3286_v62 = vld [vmem:[#allocation7 + $0x1cc] sm:$0xf]  ;;  %v2431_v48 = vld [vmem:[#allocation7 + $0xf0] sm:$0xf] }
 0x12f   :  { %1869 = vmatmul.bf16.vlgmr.msra.gmra.mxu2 %v3642_v29  ;;  %1882 = vmatmul.bf16.vlgmr.msra.gmra.mxu3 %v3644_v30  ;;  %v2537_v63 = vld [vmem:[#allocation7 + $0x1e4] sm:$0xf0]  ;;  %v3262_v49 = vld [vmem:[#allocation7 + $0x108] sm:$0xf0] }
 0x130   :  { %1917 = vmatpush.bf16.msrb.mxu2 %v2844_v14  ;;  %1930 = vmatpush.bf16.msrb.mxu3 %v3068_v15  ;;  %v2932_v14 = vor.u32 %v3384_v4, %v2929_v5  ;;  %v3156_v15 = vor.u32 %v3440_v6, %v3153_v7  ;;  %v2820_v4 = vor.u32 %v3356_v54, %v2817_v55  ;;  %v2739_v6 = vld [vmem:[#allocation7 + $0x358] sm:$0xf]  ;;  %v3339_v7 = vld [vmem:[#allocation7 + $0x370] sm:$0xf0]  ;;  %v2907_v54 = vld [vmem:[#allocation7 + $0x4a8] sm:$0xf] }
 0x131   :  { %v3381_v55 = vld [vmem:[#allocation7 + $0x4c0] sm:$0xf0] }
 0x132   :  { %1893 = vmatpush.bf16.msrb.mxu0 %v2340_v20  ;;  %1906 = vmatpush.bf16.msrb.mxu1 %v2564_v21  ;;  %v2428_v20 = vor.u32 %v3258_v10, %v2425_v11  ;;  %v2652_v21 = vor.u32 %v3314_v12, %v2649_v13  ;;  %v3405_v10 = vld [vmem:[#allocation7 + $0x584] sm:$0xf]  ;;  %v3013_v11 = vld [vmem:[#allocation7 + $0x59c] sm:$0xf0]  ;;  %v2540_v13 = vor.u32 %v3286_v62, %v2537_v63 }
 0x133   :  { %v2908_v62 = vor.u32 %v3381_v55, %v2907_v54  ;;  %v3273_v54 = vld [vmem:[#allocation7 + $0x164] sm:$0xf]  ;;  %v2489_v55 = vld [vmem:[#allocation7 + $0x17c] sm:$0xf0] }
 0x134   :  { %1918 = vmatpush.bf16.msrb.mxu2 %v2816_v28  ;;  %1931 = vmatpush.bf16.msrb.mxu3 %v3040_v31  ;;  %v3370_v28 = vld [vmem:[#allocation7 + $0x46c] sm:$0xf]  ;;  %v2873_v31 = vld [vmem:[#allocation7 + $0x484] sm:$0xf0] }
 0x136   :  { %1894 = vmatpush.bf16.msrb.mxu0 %v2312_v38  ;;  %1907 = vmatpush.bf16.msrb.mxu1 %v2536_v39  ;;  %v3300_v38 = vld [vmem:[#allocation7 + $0x23c] sm:$0xf]  ;;  %v2593_v39 = vld [vmem:[#allocation7 + $0x254] sm:$0xf0] }
 0x137   :  { %v2596_v47 = vor.u32 %v3300_v38, %v2593_v39 }
 0x138   :  { %1919 = vmatpush.bf16.msrb.mxu2 %v2788_v45  ;;  %1932 = vmatpush.bf16.msrb.mxu3 %v3012_v46  ;;  %v3069_v45 = vld [vmem:[#allocation7 + $0x60c] sm:$0xf0]  ;;  %v2372_v46 = vor.u32 %v3244_v36, %v2369_v37  ;;  %v2459_v36 = vld [vmem:[#allocation7 + $0x128] sm:$0xf]  ;;  %v3269_v37 = vld [vmem:[#allocation7 + $0x140] sm:$0xf0] }
 0x139   :  { %1895 = vmatmul.bf16.vlgmr.msrb.gmra.mxu0 %v3636_v2  ;;  %1908 = vmatmul.bf16.vlgmr.msrb.gmra.mxu1 %v3638_v3  ;;  %v3072_v53 = vor.u32 %v3419_v44, %v3069_v45  ;;  %v3159_v44 = vld [vmem:[#allocation7 + $0x6a0] sm:$0xf]  ;;  %v3444_v45 = vld [vmem:[#allocation7 + $0x6b8] sm:$0xf0] }
 0x13a   :  { %1939 = vmatpush.bf16.msra.mxu0 %v2512_v40  ;;  %1952 = vmatpush.bf16.msra.mxu1 %v2736_v41  ;;  %v2876_v40 = vor.u32 %v3370_v28, %v2873_v31  ;;  %v3100_v41 = vor.u32 %v3426_v32, %v3097_v33  ;;  %v3187_v28 = vld [vmem:[#allocation7 + $0x6d8] sm:$0xf]  ;;  %v3451_v31 = vld [vmem:[#allocation7 + $0x6f0] sm:$0xf0]  ;;  %v2488_v32 = vor.u32 %v3276_v17, %v2487_v16 }
 0x13b   :  { %v3188_v39 = vor.u32 %v3451_v31, %v3187_v28  ;;  %v2851_v16 = vld [vmem:[#allocation7 + $0x438] sm:$0xf]  ;;  %v3367_v17 = vld [vmem:[#allocation7 + $0x450] sm:$0xf0]  ;;  %v2823_v28 = vld [vmem:[#allocation7 + $0x400] sm:$0xf] }
 0x13c   :  { %1920 = vmatpush.bf16.msrb.mxu2 %v2760_v59  ;;  %1933 = vmatpush.bf16.msrb.mxu3 %v2984_v60  ;;  %v2568_v59 = vor.u32 %v3293_v50, %v2565_v51  ;;  %v3230_v60 = vld [vmem:[#allocation7 + $0xc] sm:$0xf]  ;;  %v2936_v50 = vor.u32 %v3388_v43, %v2935_v42  ;;  %v3160_v51 = vor.u32 %v3444_v45, %v3159_v44  ;;  %v3360_v31 = vld [vmem:[#allocation7 + $0x418] sm:$0xf0]  ;;  %v2517_v43 = vld [vmem:[#allocation7 + $0x1b4] sm:$0xf0] }
 0x13d   :  { %v2316_v12 = vor.u32 %v3230_v60, %v2313_v61  ;;  %v2403_v60 = vld [vmem:[#allocation7 + $0xb8] sm:$0xf]  ;;  %v3255_v61 = vld [vmem:[#allocation7 + $0xd0] sm:$0xf0]  ;;  %v3280_v42 = vld [vmem:[#allocation7 + $0x19c] sm:$0xf] }
 0x13e   :  { %1940 = vmatpush.bf16.msra.mxu0 %v2484_v56  ;;  %1953 = vmatpush.bf16.msra.mxu1 %v2708_v57  ;;  %v3412_v56 = vld [vmem:[#allocation7 + $0x5bc] sm:$0xf]  ;;  %v3041_v57 = vld [vmem:[#allocation7 + $0x5d4] sm:$0xf0] }
 0x13f   :  { %1921 = vmatmul.bf16.vlgmr.msrb.gmra.mxu2 %v3642_v29  ;;  %1934 = vmatmul.bf16.vlgmr.msrb.gmra.mxu3 %v3644_v30  ;;  %v3044_v5 = vor.u32 %v3412_v56, %v3041_v57  ;;  %v3131_v56 = vld [vmem:[#allocation7 + $0x668] sm:$0xf]  ;;  %v3437_v57 = vld [vmem:[#allocation7 + $0x680] sm:$0xf0]  ;;  %v3336_v44 = vld [vmem:[#allocation7 + $0x35c] sm:$0xf] }
 0x140   :  { %1965 = vmatpush.bf16.msra.mxu2 %v2960_v0  ;;  %1978 = vmatpush.bf16.msra.mxu3 %v3184_v1  ;;  %v2515_v0 = vld [vmem:[#allocation7 + $0x198] sm:$0xf]  ;;  %v3283_v1 = vld [vmem:[#allocation7 + $0x1b0] sm:$0xf0]  ;;  %v3132_v63 = vor.u32 %v3437_v57, %v3131_v56  ;;  %v3329_v56 = vld [vmem:[#allocation7 + $0x324] sm:$0xf] }
 0x141   :  { %v2741_v45 = vld [vmem:[#allocation7 + $0x374] sm:$0xf0] }
 0x142   :  { %1941 = vmatpush.bf16.msra.mxu0 %v2456_v8  ;;  %1954 = vmatpush.bf16.msra.mxu1 %v2680_v9  ;;  %v3349_v8 = vld [vmem:[#allocation7 + $0x3c4] sm:$0xf]  ;;  %v2789_v9 = vld [vmem:[#allocation7 + $0x3dc] sm:$0xf0] }
 0x143   :  { %v2792_v19 = vor.u32 %v3349_v8, %v2789_v9  ;;  %v2404_v8 = vor.u32 %v3255_v61, %v2403_v60  ;;  %v2767_v60 = vld [vmem:[#allocation7 + $0x390] sm:$0xf]  ;;  %v3346_v61 = vld [vmem:[#allocation7 + $0x3a8] sm:$0xf0] }
 0x144   :  { %1966 = vmatpush.bf16.msra.mxu2 %v2932_v14  ;;  %1979 = vmatpush.bf16.msra.mxu3 %v3156_v15  ;;  %v2516_v14 = vor.u32 %v3283_v1, %v2515_v0  ;;  %v2740_v15 = vor.u32 %v3339_v7, %v2739_v6  ;;  %v2627_v0 = vld [vmem:[#allocation7 + $0x278] sm:$0xf]  ;;  %v3311_v1 = vld [vmem:[#allocation7 + $0x290] sm:$0xf0]  ;;  %v3103_v6 = vld [vmem:[#allocation7 + $0x630] sm:$0xf] }
 0x145   :  { %v3430_v7 = vld [vmem:[#allocation7 + $0x648] sm:$0xf0]  ;;  %v2628_v9 = vor.u32 %v3311_v1, %v2627_v0  ;;  %v3392_v0 = vld [vmem:[#allocation7 + $0x51c] sm:$0xf]  ;;  %v2965_v1 = vld [vmem:[#allocation7 + $0x534] sm:$0xf0] }
 0x146   :  { %1942 = vmatpush.bf16.msra.mxu0 %v2428_v20  ;;  %1955 = vmatpush.bf16.msra.mxu1 %v2652_v21  ;;  %v3016_v20 = vor.u32 %v3405_v10, %v3013_v11  ;;  %v3332_v21 = vld [vmem:[#allocation7 + $0x338] sm:$0xf0]  ;;  %v2375_v10 = vld [vmem:[#allocation7 + $0x80] sm:$0xf] }
 0x147   :  { %v2712_v33 = vor.u32 %v3332_v21, %v2711_v18  ;;  %v3248_v11 = vld [vmem:[#allocation7 + $0x98] sm:$0xf0]  ;;  %v3075_v18 = vld [vmem:[#allocation7 + $0x5f8] sm:$0xf] }
 0x148   :  { %1967 = vmatpush.bf16.msra.mxu2 %v2904_v26  ;;  %1980 = vmatpush.bf16.msra.mxu3 %v3128_v27  ;;  %v2963_v26 = vld [vmem:[#allocation7 + $0x518] sm:$0xf]  ;;  %v3395_v27 = vld [vmem:[#allocation7 + $0x530] sm:$0xf0] }
 0x149   :  { %v2964_v38 = vor.u32 %v3395_v27, %v2963_v26  ;;  %v2571_v26 = vld [vmem:[#allocation7 + $0x208] sm:$0xf]  ;;  %v3297_v27 = vld [vmem:[#allocation7 + $0x220] sm:$0xf0] }
 0x14a   :  { %1943 = vmatpush.bf16.msra.mxu0 %v2400_v34  ;;  %1956 = vmatpush.bf16.msra.mxu1 %v2624_v35  ;;  %v2764_v34 = vor.u32 %v3342_v22, %v2761_v23  ;;  %v2988_v35 = vor.u32 %v3398_v24, %v2985_v25  ;;  %v2347_v22 = vld [vmem:[#allocation7 + $0x48] sm:$0xf]  ;;  %v3241_v23 = vld [vmem:[#allocation7 + $0x60] sm:$0xf0]  ;;  %v2852_v24 = vor.u32 %v3367_v17, %v2851_v16  ;;  %v2937_v17 = vld [vmem:[#allocation7 + $0x4fc] sm:$0xf0] }
 0x14b   :  { %v3385_v16 = vld [vmem:[#allocation7 + $0x4e4] sm:$0xf] }
 0x14c   :  { %1968 = vmatpush.bf16.msra.mxu2 %v2876_v40  ;;  %1981 = vmatpush.bf16.msra.mxu3 %v3100_v41  ;;  %v2683_v40 = vld [vmem:[#allocation7 + $0x2e8] sm:$0xf]  ;;  %v3325_v41 = vld [vmem:[#allocation7 + $0x300] sm:$0xf0] }
 0x14e   :  { %1944 = vmatpush.bf16.msra.mxu0 %v2372_v46  ;;  %1957 = vmatpush.bf16.msra.mxu1 %v2596_v47  ;;  %v2460_v46 = vor.u32 %v3269_v37, %v2459_v36  ;;  %v2684_v47 = vor.u32 %v3325_v41, %v2683_v40  ;;  %v2319_v36 = vld [vmem:[#allocation7 + $0x10] sm:$0xf]  ;;  %v3234_v37 = vld [vmem:[#allocation7 + $0x28] sm:$0xf0] }
 0x14f   :  { %v3290_v41 = vld [vmem:[#allocation7 + $0x1e8] sm:$0xf0] }
 0x150   :  { %1969 = vmatpush.bf16.msra.mxu2 %v2848_v52  ;;  %1982 = vmatpush.bf16.msra.mxu3 %v3072_v53  ;;  %v2655_v52 = vld [vmem:[#allocation7 + $0x2b0] sm:$0xf]  ;;  %v3318_v53 = vld [vmem:[#allocation7 + $0x2c8] sm:$0xf0] }
 0x152   :  { %1945 = vmatpush.bf16.msra.mxu0 %v2344_v58  ;;  %1958 = vmatpush.bf16.msra.mxu1 %v2568_v59  ;;  %v2432_v58 = vor.u32 %v3262_v49, %v2431_v48  ;;  %v2656_v59 = vor.u32 %v3318_v53, %v2655_v52  ;;  %v3019_v48 = vld [vmem:[#allocation7 + $0x588] sm:$0xf]  ;;  %v3409_v49 = vld [vmem:[#allocation7 + $0x5a0] sm:$0xf0]  ;;  %v2520_v52 = vor.u32 %v3280_v42, %v2517_v43  ;;  %v3371_v42 = vld [vmem:[#allocation7 + $0x474] sm:$0xf] }
 0x153   :  { %v2744_v53 = vor.u32 %v3336_v44, %v2741_v45  ;;  %v2881_v43 = vld [vmem:[#allocation7 + $0x48c] sm:$0xf0]  ;;  %v3427_v44 = vld [vmem:[#allocation7 + $0x634] sm:$0xf] }
 0x154   :  { %1970 = vmatpush.bf16.msra.mxu2 %v2820_v4  ;;  %1983 = vmatpush.bf16.msra.mxu3 %v3044_v5  ;;  %v2879_v4 = vld [vmem:[#allocation7 + $0x470] sm:$0xf]  ;;  %v3374_v5 = vld [vmem:[#allocation7 + $0x488] sm:$0xf0] }
 0x155   :  { %v3105_v45 = vld [vmem:[#allocation7 + $0x64c] sm:$0xf0] }
 0x156   :  { %1946 = vmatpush.bf16.msra.mxu0 %v2316_v12  ;;  %1959 = vmatpush.bf16.msra.mxu1 %v2540_v13  ;;  %v2880_v12 = vor.u32 %v3374_v5, %v2879_v4  ;;  %v3104_v13 = vor.u32 %v3430_v7, %v3103_v6  ;;  %v3448_v4 = vld [vmem:[#allocation7 + $0x6dc] sm:$0xf]  ;;  %v3189_v5 = vld [vmem:[#allocation7 + $0x6f4] sm:$0xf0]  ;;  %v2492_v6 = vor.u32 %v3273_v54, %v2489_v55 }
 0x157   :  { %v3364_v54 = vld [vmem:[#allocation7 + $0x43c] sm:$0xf]  ;;  %v2853_v55 = vld [vmem:[#allocation7 + $0x454] sm:$0xf0] }
 0x158   :  { %1971 = vmatpush.bf16.msra.mxu2 %v2792_v19  ;;  %1984 = vmatpush.bf16.msra.mxu3 %v3016_v20  ;;  %v3423_v19 = vld [vmem:[#allocation7 + $0x610] sm:$0xf0]  ;;  %v2376_v20 = vor.u32 %v3248_v11, %v2375_v10  ;;  %v3266_v10 = vld [vmem:[#allocation7 + $0x12c] sm:$0xf]  ;;  %v2461_v11 = vld [vmem:[#allocation7 + $0x144] sm:$0xf0] }
 0x159   :  { %1947 = vmatmul.bf16.vlgmr.msra.gmra.mxu0 %v3636_v2  ;;  %1960 = vmatmul.bf16.vlgmr.msra.gmra.mxu1 %v3638_v3  ;;  %v3076_v25 = vor.u32 %v3423_v19, %v3075_v18  ;;  %v3441_v18 = vld [vmem:[#allocation7 + $0x6a4] sm:$0xf]  ;;  %v3161_v19 = vld [vmem:[#allocation7 + $0x6bc] sm:$0xf0] }
 0x15a   :  { %1991 = vmatpush.bf16.msrb.mxu0 %v2516_v14  ;;  %2004 = vmatpush.bf16.msrb.mxu1 %v2740_v15  ;;  %v2599_v14 = vld [vmem:[#allocation7 + $0x240] sm:$0xf]  ;;  %v3304_v15 = vld [vmem:[#allocation7 + $0x258] sm:$0xf0] }
 0x15b   :  { %v2600_v21 = vor.u32 %v3304_v15, %v2599_v14  ;;  %v3322_v14 = vld [vmem:[#allocation7 + $0x2ec] sm:$0xf]  ;;  %v2685_v15 = vld [vmem:[#allocation7 + $0x304] sm:$0xf0] }
 0x15c   :  { %1972 = vmatpush.bf16.msra.mxu2 %v2764_v34  ;;  %1985 = vmatpush.bf16.msra.mxu3 %v2988_v35  ;;  %v2348_v34 = vor.u32 %v3241_v23, %v2347_v22  ;;  %v2572_v35 = vor.u32 %v3297_v27, %v2571_v26  ;;  %v3259_v22 = vld [vmem:[#allocation7 + $0xf4] sm:$0xf]  ;;  %v2433_v23 = vld [vmem:[#allocation7 + $0x10c] sm:$0xf0] }
 0x15d   :  { %v3315_v26 = vld [vmem:[#allocation7 + $0x2b4] sm:$0xf]  ;;  %v2657_v27 = vld [vmem:[#allocation7 + $0x2cc] sm:$0xf0] }
 0x15e   :  { %1992 = vmatpush.bf16.msrb.mxu0 %v2488_v32  ;;  %2005 = vmatpush.bf16.msrb.mxu1 %v2712_v33  ;;  %v3047_v32 = vld [vmem:[#allocation7 + $0x5c0] sm:$0xf]  ;;  %v3416_v33 = vld [vmem:[#allocation7 + $0x5d8] sm:$0xf0] }
 0x15f   :  { %1973 = vmatmul.bf16.vlgmr.msra.gmra.mxu2 %v3642_v29  ;;  %1986 = vmatmul.bf16.vlgmr.msra.gmra.mxu3 %v3644_v30  ;;  %v3048_v40 = vor.u32 %v3416_v33, %v3047_v32  ;;  %v3434_v32 = vld [vmem:[#allocation7 + $0x66c] sm:$0xf]  ;;  %v3133_v33 = vld [vmem:[#allocation7 + $0x684] sm:$0xf0] }
 0x160   :  { %2017 = vmatpush.bf16.msrb.mxu2 %v2964_v38  ;;  %2030 = vmatpush.bf16.msrb.mxu3 %v3188_v39  ;;  %v2543_v38 = vld [vmem:[#allocation7 + $0x1d0] sm:$0xf]  ;;  %v2824_v39 = vor.u32 %v3360_v31, %v2823_v28  ;;  %v3378_v28 = vld [vmem:[#allocation7 + $0x4ac] sm:$0xf]  ;;  %v2909_v31 = vld [vmem:[#allocation7 + $0x4c4] sm:$0xf0] }
 0x162   :  { %1993 = vmatpush.bf16.msrb.mxu0 %v2460_v46  ;;  %2006 = vmatpush.bf16.msrb.mxu1 %v2684_v47  ;;  %v2795_v46 = vld [vmem:[#allocation7 + $0x3c8] sm:$0xf]  ;;  %v3353_v47 = vld [vmem:[#allocation7 + $0x3e0] sm:$0xf0] }
 0x163   :  { %v2796_v57 = vor.u32 %v3353_v47, %v2795_v46 }
 0x164   :  { %2018 = vmatpush.bf16.msrb.mxu2 %v2936_v50  ;;  %2031 = vmatpush.bf16.msrb.mxu3 %v3160_v51  ;;  %v2320_v50 = vor.u32 %v3234_v37, %v2319_v36  ;;  %v2544_v51 = vor.u32 %v3290_v41, %v2543_v38  ;;  %v3252_v36 = vld [vmem:[#allocation7 + $0xbc] sm:$0xf]  ;;  %v2405_v37 = vld [vmem:[#allocation7 + $0xd4] sm:$0xf0]  ;;  %v2912_v38 = vor.u32 %v3378_v28, %v2909_v31  ;;  %v2495_v28 = vld [vmem:[#allocation7 + $0x168] sm:$0xf] }
 0x165   :  { %v2629_v41 = vld [vmem:[#allocation7 + $0x294] sm:$0xf0]  ;;  %v2408_v46 = vor.u32 %v3252_v36, %v2405_v37  ;;  %v3277_v31 = vld [vmem:[#allocation7 + $0x180] sm:$0xf0]  ;;  %v3343_v36 = vld [vmem:[#allocation7 + $0x394] sm:$0xf] }
 0x166   :  { %1994 = vmatpush.bf16.msrb.mxu0 %v2432_v58  ;;  %2007 = vmatpush.bf16.msrb.mxu1 %v2656_v59  ;;  %v3020_v58 = vor.u32 %v3409_v49, %v3019_v48  ;;  %v2713_v59 = vld [vmem:[#allocation7 + $0x33c] sm:$0xf0]  ;;  %v3245_v48 = vld [vmem:[#allocation7 + $0x84] sm:$0xf]  ;;  %v2769_v37 = vld [vmem:[#allocation7 + $0x3ac] sm:$0xf0] }
 0x167   :  { %v2716_v7 = vor.u32 %v3329_v56, %v2713_v59  ;;  %v2377_v49 = vld [vmem:[#allocation7 + $0x9c] sm:$0xf0]  ;;  %v3420_v56 = vld [vmem:[#allocation7 + $0x5fc] sm:$0xf] }
 0x168   :  { %2019 = vmatpush.bf16.msrb.mxu2 %v2908_v62  ;;  %2032 = vmatpush.bf16.msrb.mxu3 %v3132_v63  ;;  %v2991_v62 = vld [vmem:[#allocation7 + $0x550] sm:$0xf]  ;;  %v3402_v63 = vld [vmem:[#allocation7 + $0x568] sm:$0xf0] }
 0x16a   :  { %1995 = vmatpush.bf16.msrb.mxu0 %v2404_v8  ;;  %2008 = vmatpush.bf16.msrb.mxu1 %v2628_v9  ;;  %v2768_v8 = vor.u32 %v3346_v61, %v2767_v60  ;;  %v2992_v9 = vor.u32 %v3402_v63, %v2991_v62  ;;  %v3238_v60 = vld [vmem:[#allocation7 + $0x4c] sm:$0xf]  ;;  %v2349_v61 = vld [vmem:[#allocation7 + $0x64] sm:$0xf0]  ;;  %v2856_v62 = vor.u32 %v3364_v54, %v2853_v55  ;;  %v3389_v55 = vld [vmem:[#allocation7 + $0x500] sm:$0xf0] }
 0x16b   :  { %v2943_v54 = vld [vmem:[#allocation7 + $0x4e8] sm:$0xf] }
 0x16c   :  { %2020 = vmatpush.bf16.msrb.mxu2 %v2880_v12  ;;  %2033 = vmatpush.bf16.msrb.mxu3 %v3104_v13  ;;  %v2968_v12 = vor.u32 %v3392_v0, %v2965_v1  ;;  %v3192_v13 = vor.u32 %v3448_v4, %v3189_v5  ;;  %v3294_v0 = vld [vmem:[#allocation7 + $0x20c] sm:$0xf]  ;;  %v2573_v1 = vld [vmem:[#allocation7 + $0x224] sm:$0xf0]  ;;  %v3357_v4 = vld [vmem:[#allocation7 + $0x404] sm:$0xf] }
 0x16d   :  { %v2825_v5 = vld [vmem:[#allocation7 + $0x41c] sm:$0xf0] }
 0x16e   :  { %1996 = vmatpush.bf16.msrb.mxu0 %v2376_v20  ;;  %2009 = vmatpush.bf16.msrb.mxu1 %v2600_v21  ;;  %v2464_v20 = vor.u32 %v3266_v10, %v2461_v11  ;;  %v2688_v21 = vor.u32 %v3322_v14, %v2685_v15  ;;  %v3231_v10 = vld [vmem:[#allocation7 + $0x14] sm:$0xf]  ;;  %v2321_v11 = vld [vmem:[#allocation7 + $0x2c] sm:$0xf0] }
 0x16f   :  { %v2545_v15 = vld [vmem:[#allocation7 + $0x1ec] sm:$0xf0] }
 0x170   :  { %2021 = vmatpush.bf16.msrb.mxu2 %v2852_v24  ;;  %2034 = vmatpush.bf16.msrb.mxu3 %v3076_v25  ;;  %v2940_v24 = vor.u32 %v3385_v16, %v2937_v17  ;;  %v3164_v25 = vor.u32 %v3441_v18, %v3161_v19  ;;  %v2523_v16 = vld [vmem:[#allocation7 + $0x1a0] sm:$0xf]  ;;  %v3284_v17 = vld [vmem:[#allocation7 + $0x1b8] sm:$0xf0] }
 0x171   :  { %v2747_v18 = vld [vmem:[#allocation7 + $0x360] sm:$0xf]  ;;  %v3340_v19 = vld [vmem:[#allocation7 + $0x378] sm:$0xf0] }
 0x172   :  { %1997 = vmatpush.bf16.msrb.mxu0 %v2348_v34  ;;  %2010 = vmatpush.bf16.msrb.mxu1 %v2572_v35  ;;  %v2436_v34 = vor.u32 %v3259_v22, %v2433_v23  ;;  %v2660_v35 = vor.u32 %v3315_v26, %v2657_v27  ;;  %v3406_v22 = vld [vmem:[#allocation7 + $0x58c] sm:$0xf]  ;;  %v3021_v23 = vld [vmem:[#allocation7 + $0x5a4] sm:$0xf0]  ;;  %v2524_v26 = vor.u32 %v3284_v17, %v2523_v16 }
 0x173   :  { %v2748_v27 = vor.u32 %v3340_v19, %v2747_v18  ;;  %v2635_v18 = vld [vmem:[#allocation7 + $0x280] sm:$0xf]  ;;  %v3312_v19 = vld [vmem:[#allocation7 + $0x298] sm:$0xf0] }
 0x174   :  { %2022 = vmatpush.bf16.msrb.mxu2 %v2824_v39  ;;  %2035 = vmatpush.bf16.msrb.mxu3 %v3048_v40  ;;  %v3136_v39 = vor.u32 %v3434_v32, %v3133_v33  ;;  %v3308_v40 = vld [vmem:[#allocation7 + $0x27c] sm:$0xf]  ;;  %v2719_v32 = vld [vmem:[#allocation7 + $0x328] sm:$0xf] }
 0x175   :  { %v2632_v47 = vor.u32 %v3308_v40, %v2629_v41  ;;  %v2971_v40 = vld [vmem:[#allocation7 + $0x520] sm:$0xf]  ;;  %v3396_v41 = vld [vmem:[#allocation7 + $0x538] sm:$0xf0] }
 0x176   :  { %1998 = vmatpush.bf16.msrb.mxu0 %v2320_v50  ;;  %2011 = vmatpush.bf16.msrb.mxu1 %v2544_v51  ;;  %v2884_v50 = vor.u32 %v3371_v42, %v2881_v43  ;;  %v3108_v51 = vor.u32 %v3427_v44, %v3105_v45  ;;  %v3195_v42 = vld [vmem:[#allocation7 + $0x6e0] sm:$0xf]  ;;  %v3452_v43 = vld [vmem:[#allocation7 + $0x6f8] sm:$0xf0]  ;;  %v2496_v44 = vor.u32 %v3277_v31, %v2495_v28  ;;  %v2383_v31 = vld [vmem:[#allocation7 + $0x88] sm:$0xf] }
 0x178   :  { %2023 = vmatpush.bf16.msrb.mxu2 %v2796_v57  ;;  %2036 = vmatpush.bf16.msrb.mxu3 %v3020_v58  ;;  %v3077_v57 = vld [vmem:[#allocation7 + $0x614] sm:$0xf0]  ;;  %v2380_v58 = vor.u32 %v3245_v48, %v2377_v49  ;;  %v2467_v48 = vld [vmem:[#allocation7 + $0x130] sm:$0xf]  ;;  %v3270_v49 = vld [vmem:[#allocation7 + $0x148] sm:$0xf0] }
 0x179   :  { %1999 = vmatmul.bf16.vlgmr.msrb.gmra.mxu0 %v3636_v2  ;;  %2012 = vmatmul.bf16.vlgmr.msrb.gmra.mxu1 %v3638_v3  ;;  %v3080_v63 = vor.u32 %v3420_v56, %v3077_v57  ;;  %v3167_v56 = vld [vmem:[#allocation7 + $0x6a8] sm:$0xf]  ;;  %v3445_v57 = vld [vmem:[#allocation7 + $0x6c0] sm:$0xf0] }
 0x17a   :  { %2043 = vmatpush.bf16.msra.mxu0 %v2520_v52  ;;  %2056 = vmatpush.bf16.msra.mxu1 %v2744_v53  ;;  %v3301_v52 = vld [vmem:[#allocation7 + $0x244] sm:$0xf]  ;;  %v2601_v53 = vld [vmem:[#allocation7 + $0x25c] sm:$0xf0] }
 0x17b   :  { %v2604_v59 = vor.u32 %v3301_v52, %v2601_v53  ;;  %v2691_v52 = vld [vmem:[#allocation7 + $0x2f0] sm:$0xf]  ;;  %v3326_v53 = vld [vmem:[#allocation7 + $0x308] sm:$0xf0] }
 0x17c   :  { %2024 = vmatpush.bf16.msrb.mxu2 %v2768_v8  ;;  %2037 = vmatpush.bf16.msrb.mxu3 %v2992_v9  ;;  %v2352_v8 = vor.u32 %v3238_v60, %v2349_v61  ;;  %v2576_v9 = vor.u32 %v3294_v0, %v2573_v1  ;;  %v3669_v60 = vld [vmem:[%s3693_s6] sm:$0xff]  ;;  %v2944_v1 = vor.u32 %v3389_v55, %v2943_v54  ;;  %v3361_v54 = vld [vmem:[#allocation7 + $0x420] sm:$0xf0]  ;;  %v3055_v55 = vld [vmem:[#allocation7 + $0x5c8] sm:$0xf]  ;;  %s3577_s6 = smov [#allocation8]  }
 0x17d   :  { %v3263_v0 = vld [vmem:[#allocation7 + $0x110] sm:$0xf0]  ;;  %s2160_s22 = sshll.u32 %s3577_s6, 4  ;;  %s2161_s22 = int_to_ptr.vmem [resolvable:$true] %s2160_s22 }
 0x17e   :  { %2044 = vmatpush.bf16.msra.mxu0 %v2492_v6  ;;  %2057 = vmatpush.bf16.msra.mxu1 %v2716_v7  ;;  %v3413_v6 = vld [vmem:[#allocation7 + $0x5c4] sm:$0xf]  ;;  %v3049_v7 = vld [vmem:[#allocation7 + $0x5dc] sm:$0xf0] }
 0x17f   :  { %2025 = vmatmul.bf16.vlgmr.msrb.gmra.mxu2 %v3642_v29  ;;  %2038 = vmatmul.bf16.vlgmr.msrb.gmra.mxu3 %v3644_v30  ;;  %v3052_v14 = vor.u32 %v3413_v6, %v3049_v7  ;;  %v3319_v6 = vld [vmem:[#allocation7 + $0x2d0] sm:$0xf0]  ;;  %v2915_v7 = vld [vmem:[#allocation7 + $0x4b0] sm:$0xf] }
 0x180   :  { %2069 = vmatpush.bf16.msra.mxu2 %v2968_v12  ;;  %2082 = vmatpush.bf16.msra.mxu3 %v3192_v13  ;;  %v3287_v12 = vld [vmem:[#allocation7 + $0x1d4] sm:$0xf]  ;;  %v2828_v13 = vor.u32 %v3357_v4, %v2825_v5  ;;  %v3168_v4 = vor.u32 %v3445_v57, %v3167_v56  ;;  %v2663_v5 = vld [vmem:[#allocation7 + $0x2b8] sm:$0xf]  ;;  %v3417_v56 = vld [vmem:[#allocation7 + $0x5e0] sm:$0xf0] }
 0x182   :  { %2045 = vmatpush.bf16.msra.mxu0 %v2464_v20  ;;  %2058 = vmatpush.bf16.msra.mxu1 %v2688_v21  ;;  %v3350_v20 = vld [vmem:[#allocation7 + $0x3cc] sm:$0xf]  ;;  %v2797_v21 = vld [vmem:[#allocation7 + $0x3e4] sm:$0xf0] }
 0x183   :  { %v2800_v33 = vor.u32 %v3350_v20, %v2797_v21  ;;  %v2887_v20 = vld [vmem:[#allocation7 + $0x478] sm:$0xf]  ;;  %v3375_v21 = vld [vmem:[#allocation7 + $0x490] sm:$0xf0] }
 0x184   :  { %2070 = vmatpush.bf16.msra.mxu2 %v2940_v24  ;;  %2083 = vmatpush.bf16.msra.mxu3 %v3164_v25  ;;  %v2324_v24 = vor.u32 %v3231_v10, %v2321_v11  ;;  %v2548_v25 = vor.u32 %v3287_v12, %v2545_v15  ;;  %v3438_v10 = vld [vmem:[#allocation7 + $0x688] sm:$0xf0]  ;;  %v617_v11 = vperm.slane %v3669_v60, 0  ;;  %v3256_v15 = vld [vmem:[#allocation7 + $0xd8] sm:$0xf0] }
 0x186   :  { %2046 = vmatpush.bf16.msra.mxu0 %v2436_v34  ;;  %2059 = vmatpush.bf16.msra.mxu1 %v2660_v35  ;;  %v3024_v34 = vor.u32 %v3406_v22, %v3021_v23  ;;  %v3333_v35 = vld [vmem:[#allocation7 + $0x340] sm:$0xf0]  ;;  %v3111_v22 = vld [vmem:[#allocation7 + $0x638] sm:$0xf]  ;;  %v3431_v23 = vld [vmem:[#allocation7 + $0x650] sm:$0xf0] }
 0x187   :  { %v2720_v45 = vor.u32 %v3333_v35, %v2719_v32  ;;  %v3249_v32 = vld [vmem:[#allocation7 + $0xa0] sm:$0xf0]  ;;  %v2607_v35 = vld [vmem:[#allocation7 + $0x248] sm:$0xf] }
 0x188   :  { %2071 = vmatpush.bf16.msra.mxu2 %v2912_v38  ;;  %2084 = vmatpush.bf16.msra.mxu3 %v3136_v39  ;;  %v3399_v38 = vld [vmem:[#allocation7 + $0x554] sm:$0xf]  ;;  %v2993_v39 = vld [vmem:[#allocation7 + $0x56c] sm:$0xf0] }
 0x18a   :  { %2047 = vmatpush.bf16.msra.mxu0 %v2408_v46  ;;  %2060 = vmatpush.bf16.msra.mxu1 %v2632_v47  ;;  %v2772_v46 = vor.u32 %v3343_v36, %v2769_v37  ;;  %v2996_v47 = vor.u32 %v3399_v38, %v2993_v39  ;;  %v3305_v36 = vld [vmem:[#allocation7 + $0x260] sm:$0xf0]  ;;  %v2859_v37 = vld [vmem:[#allocation7 + $0x440] sm:$0xf]  ;;  %v3368_v38 = vld [vmem:[#allocation7 + $0x458] sm:$0xf0] }
 0x18b   :  { %v3083_v39 = vld [vmem:[#allocation7 + $0x600] sm:$0xf] }
 0x18c   :  { %2072 = vmatpush.bf16.msra.mxu2 %v2884_v50  ;;  %2085 = vmatpush.bf16.msra.mxu3 %v3108_v51  ;;  %v2972_v50 = vor.u32 %v3396_v41, %v2971_v40  ;;  %v3196_v51 = vor.u32 %v3452_v43, %v3195_v42  ;;  %v3424_v40 = vld [vmem:[#allocation7 + $0x618] sm:$0xf0]  ;;  %v2384_v42 = vor.u32 %v3249_v32, %v2383_v31 }
 0x18d   :  { %v2608_v43 = vor.u32 %v3305_v36, %v2607_v35  ;;  %v619_v36 = vperm.slane %v3669_v60, 2 }
 0x18e   :  { %2048 = vmatpush.bf16.msra.mxu0 %v2380_v58  ;;  %2061 = vmatpush.bf16.msra.mxu1 %v2604_v59  ;;  %v2468_v58 = vor.u32 %v3270_v49, %v2467_v48  ;;  %v2692_v59 = vor.u32 %v3326_v53, %v2691_v52  ;;  %v2860_v48 = vor.u32 %v3368_v38, %v2859_v37  ;;  %v2831_v52 = vld [vmem:[#allocation7 + $0x408] sm:$0xf] }
 0x18f   :  { %v3084_v49 = vor.u32 %v3424_v40, %v3083_v39 }
 0x190   :  { %2073 = vmatpush.bf16.msra.mxu2 %v2856_v62  ;;  %2086 = vmatpush.bf16.msra.mxu3 %v3080_v63  ;;  %v2439_v63 = vld [vmem:[#allocation7 + $0xf8] sm:$0xf] }
 0x191   :  { %v2440_v12 = vor.u32 %v3263_v0, %v2439_v63  ;;  %v2551_v63 = vld [vmem:[#allocation7 + $0x1d8] sm:$0xf] }
 0x192   :  { %2049 = vmatpush.bf16.msra.mxu0 %v2352_v8  ;;  %2062 = vmatpush.bf16.msra.mxu1 %v2576_v9  ;;  %v3382_v8 = vld [vmem:[#allocation7 + $0x4c8] sm:$0xf0]  ;;  %v3139_v9 = vld [vmem:[#allocation7 + $0x670] sm:$0xf] }
 0x193   :  { %v2916_v16 = vor.u32 %v3382_v8, %v2915_v7  ;;  %v3140_v17 = vor.u32 %v3438_v10, %v3139_v9  ;;  %v2803_v7 = vld [vmem:[#allocation7 + $0x3d0] sm:$0xf]  ;;  %v3354_v8 = vld [vmem:[#allocation7 + $0x3e8] sm:$0xf0] }
 0x194   :  { %2074 = vmatpush.bf16.msra.mxu2 %v2828_v13  ;;  %2087 = vmatpush.bf16.msra.mxu3 %v3052_v14  ;;  %v2664_v13 = vor.u32 %v3319_v6, %v2663_v5  ;;  %v2411_v14 = vld [vmem:[#allocation7 + $0xc0] sm:$0xf]  ;;  %v3056_v5 = vor.u32 %v3417_v56, %v3055_v55  ;;  %v3291_v6 = vld [vmem:[#allocation7 + $0x1f0] sm:$0xf0]  ;;  %v3027_v9 = vld [vmem:[#allocation7 + $0x590] sm:$0xf] }
 0x195   :  { %v1792_v61 = vpop.f32.mrf.mxu0  ;;  %v1805_v62 = vpop.f32.mrf.mxu1  ;;  %v3410_v10 = vld [vmem:[#allocation7 + $0x5a8] sm:$0xf0] }
 0x196   :  { %2050 = vmatpush.bf16.msra.mxu0 %v2324_v24  ;;  %2063 = vmatpush.bf16.msra.mxu1 %v2548_v25  ;;  %v1793_v24 = vadd.f32 %v1792_v61, %v617_v11  ;;  %v2412_v25 = vor.u32 %v3256_v15, %v2411_v14  ;;  %v2327_v61 = vld [vmem:[#allocation7 + $0x18] sm:$0xf]  ;;  %v618_v11 = vperm.slane %v3669_v60, 1 }
 0x198   :  { %2075 = vmatpush.bf16.msra.mxu2 %v2800_v33  ;;  %2088 = vmatpush.bf16.msra.mxu3 %v3024_v34  ;;  %v2888_v33 = vor.u32 %v3375_v21, %v2887_v20  ;;  %v3112_v34 = vor.u32 %v3431_v23, %v3111_v22  ;;  %v1806_v41 = vadd.f32 %v1805_v62, %v1793_v24  ;;  %v3235_v62 = vld [vmem:[#allocation7 + $0x30] sm:$0xf0]  ;;  %v2999_v20 = vld [vmem:[#allocation7 + $0x558] sm:$0xf] }
 0x199   :  { %2051 = vmatmul.bf16.vlgmr.msra.gmra.mxu0 %v3636_v2  ;;  %2064 = vmatmul.bf16.vlgmr.msra.gmra.mxu1 %v3638_v3  ;;  %v3403_v21 = vld [vmem:[#allocation7 + $0x570] sm:$0xf0] }
 0x19a   :  { %2095 = vmatpush.bf16.msrb.mxu0 %v2524_v26  ;;  %2108 = vmatpush.bf16.msrb.mxu1 %v2748_v27  ;;  %v2636_v26 = vor.u32 %v3312_v19, %v2635_v18  ;;  %v2775_v18 = vld [vmem:[#allocation7 + $0x398] sm:$0xf]  ;;  %v3347_v19 = vld [vmem:[#allocation7 + $0x3b0] sm:$0xf0] }
 0x19c   :  { %2076 = vmatpush.bf16.msra.mxu2 %v2772_v46  ;;  %2089 = vmatpush.bf16.msra.mxu3 %v2996_v47 }
 0x19d   :  { %v1794_v27 = vpop.f32.mrf.mxu0  ;;  %v1807_v28 = vpop.f32.mrf.mxu1 }
 0x19e   :  { %2096 = vmatpush.bf16.msrb.mxu0 %v2496_v44  ;;  %2109 = vmatpush.bf16.msrb.mxu1 %v2720_v45  ;;  %v2355_v44 = vld [vmem:[#allocation7 + $0x50] sm:$0xf]  ;;  %v3242_v45 = vld [vmem:[#allocation7 + $0x68] sm:$0xf0] }
 0x19f   :  { %2077 = vmatmul.bf16.vlgmr.msra.gmra.mxu2 %v3642_v29  ;;  %2090 = vmatmul.bf16.vlgmr.msra.gmra.mxu3 %v3644_v30 }
 0x1a0   :  { %2121 = vmatpush.bf16.msrb.mxu2 %v2972_v50  ;;  %2134 = vmatpush.bf16.msrb.mxu3 %v3196_v51  ;;  %v2579_v50 = vld [vmem:[#allocation7 + $0x210] sm:$0xf]  ;;  %v3298_v51 = vld [vmem:[#allocation7 + $0x228] sm:$0xf0] }
 0x1a2   :  { %2097 = vmatpush.bf16.msrb.mxu0 %v2468_v58  ;;  %2110 = vmatpush.bf16.msrb.mxu1 %v2692_v59  ;;  %v1818_v46 = vpop.f32.mrf.mxu2  ;;  %v1831_v47 = vpop.f32.mrf.mxu3  ;;  %v2356_v58 = vor.u32 %v3242_v45, %v2355_v44  ;;  %v2580_v59 = vor.u32 %v3298_v51, %v2579_v50 }
 0x1a3   :  { %v1819_v53 = vadd.f32 %v1818_v46, %v1806_v41 }
 0x1a4   :  { %2122 = vmatpush.bf16.msrb.mxu2 %v2944_v1  ;;  %2135 = vmatpush.bf16.msrb.mxu3 %v3168_v4  ;;  %v2832_v4 = vor.u32 %v3361_v54, %v2831_v52 }
 0x1a5   :  { %v1832_v57 = vadd.f32 %v1831_v47, %v1819_v53  ;;  %v620_v47 = vperm.slane %v3669_v60, 3 }
 0x1a6   :  { %2098 = vmatpush.bf16.msrb.mxu0 %v2440_v12  ;;  %2111 = vmatpush.bf16.msrb.mxu1 %v2664_v13  ;;  %v1844_v0 = vpop.f32.mrf.mxu0  ;;  %v1857_v1 = vpop.f32.mrf.mxu1  ;;  %v2328_v12 = vor.u32 %v3235_v62, %v2327_v61  ;;  %v2552_v13 = vor.u32 %v3291_v6, %v2551_v63  ;;  %v621_v61 = vperm.slane %v3669_v60, 4 }
 0x1a7   :  { %2147 = vst [vmem:[#allocation8] sm:$0xff] %v1832_v57  ;;  %v1845_v22 = vadd.f32 %v1844_v0, %v618_v11 }
 0x1a8   :  { %2123 = vmatpush.bf16.msrb.mxu2 %v2916_v16  ;;  %2136 = vmatpush.bf16.msrb.mxu3 %v3140_v17  ;;  %v2804_v16 = vor.u32 %v3354_v8, %v2803_v7  ;;  %v3028_v17 = vor.u32 %v3410_v10, %v3027_v9 }
 0x1a9   :  { %v1858_v27 = vadd.f32 %v1857_v1, %v1845_v22 }
 0x1aa   :  { %2099 = vmatpush.bf16.msrb.mxu0 %v2412_v25  ;;  %2112 = vmatpush.bf16.msrb.mxu1 %v2636_v26  ;;  %v1820_v14 = vpop.f32.mrf.mxu2  ;;  %v1833_v15 = vpop.f32.mrf.mxu3  ;;  %v2776_v25 = vor.u32 %v3347_v19, %v2775_v18  ;;  %v3000_v26 = vor.u32 %v3403_v21, %v2999_v20 }
 0x1ac   :  { %2124 = vmatpush.bf16.msrb.mxu2 %v2888_v33  ;;  %2137 = vmatpush.bf16.msrb.mxu3 %v3112_v34 }
 0x1ae   :  { %2100 = vmatpush.bf16.msrb.mxu0 %v2384_v42  ;;  %2113 = vmatpush.bf16.msrb.mxu1 %v2608_v43  ;;  %v1846_v23 = vpop.f32.mrf.mxu0  ;;  %v1859_v24 = vpop.f32.mrf.mxu1 }
 0x1b0   :  { %2125 = vmatpush.bf16.msrb.mxu2 %v2860_v48  ;;  %2138 = vmatpush.bf16.msrb.mxu3 %v3084_v49 }
 0x1b2   :  { %2101 = vmatpush.bf16.msrb.mxu0 %v2356_v58  ;;  %2114 = vmatpush.bf16.msrb.mxu1 %v2580_v59  ;;  %v1870_v28 = vpop.f32.mrf.mxu2  ;;  %v1883_v31 = vpop.f32.mrf.mxu3 }
 0x1b3   :  { %v1871_v32 = vadd.f32 %v1870_v28, %v1858_v27 }
 0x1b4   :  { %2126 = vmatpush.bf16.msrb.mxu2 %v2832_v4  ;;  %2139 = vmatpush.bf16.msrb.mxu3 %v3056_v5 }
 0x1b5   :  { %v1884_v33 = vadd.f32 %v1883_v31, %v1871_v32 }
 0x1b6   :  { %2102 = vmatpush.bf16.msrb.mxu0 %v2328_v12  ;;  %2115 = vmatpush.bf16.msrb.mxu1 %v2552_v13  ;;  %v1896_v34 = vpop.f32.mrf.mxu0  ;;  %v1909_v35 = vpop.f32.mrf.mxu1  ;;  %v622_v12 = vperm.slane %v3669_v60, 5 }
 0x1b7   :  { %2148 = vst [vmem:[#allocation8 + $0x8] sm:$0xff] %v1884_v33  ;;  %v1897_v38 = vadd.f32 %v1896_v34, %v619_v36 }
 0x1b8   :  { %2127 = vmatpush.bf16.msrb.mxu2 %v2804_v16  ;;  %2140 = vmatpush.bf16.msrb.mxu3 %v3028_v17 }
 0x1b9   :  { %2103 = vmatmul.bf16.vlgmr.msrb.gmra.mxu0 %v3636_v2  ;;  %2116 = vmatmul.bf16.vlgmr.msrb.gmra.mxu1 %v3638_v3  ;;  %v1910_v40 = vadd.f32 %v1909_v35, %v1897_v38 }
 0x1ba   :  { %v1872_v37 = vpop.f32.mrf.mxu2  ;;  %v1885_v2 = vpop.f32.mrf.mxu3 }
 0x1bc   :  { %2128 = vmatpush.bf16.msrb.mxu2 %v2776_v25  ;;  %2141 = vmatpush.bf16.msrb.mxu3 %v3000_v26  ;;  %v623_v25 = vperm.slane %v3669_v60, 6 }
 0x1be   :  { %v1898_v3 = vpop.f32.mrf.mxu0  ;;  %v1911_v39 = vpop.f32.mrf.mxu1 }
 0x1bf   :  { %2129 = vmatmul.bf16.vlgmr.msrb.gmra.mxu2 %v3642_v29  ;;  %2142 = vmatmul.bf16.vlgmr.msrb.gmra.mxu3 %v3644_v30 }
 0x1c2   :  { %v1922_v41 = vpop.f32.mrf.mxu2  ;;  %v1935_v42 = vpop.f32.mrf.mxu3 }
 0x1c3   :  { %v1923_v43 = vadd.f32 %v1922_v41, %v1910_v40 }
 0x1c5   :  { %v1936_v44 = vadd.f32 %v1935_v42, %v1923_v43 }
 0x1c7   :  { %2149 = vst [vmem:[#allocation8 + $0x10] sm:$0xff] %v1936_v44 }
 0x1ca   :  { %v1924_v45 = vpop.f32.mrf.mxu2  ;;  %v1937_v29 = vpop.f32.mrf.mxu3 }
 0x1d6   :  { %v1948_v46 = vpop.f32.mrf.mxu0  ;;  %v1961_v30 = vpop.f32.mrf.mxu1 }
 0x1d7   :  { %v1949_v48 = vadd.f32 %v1948_v46, %v620_v47 }
 0x1d9   :  { %v1962_v51 = vadd.f32 %v1961_v30, %v1949_v48 }
 0x1de   :  { %v1950_v49 = vpop.f32.mrf.mxu0  ;;  %v1963_v50 = vpop.f32.mrf.mxu1 }
 0x1e2   :  { %v1974_v52 = vpop.f32.mrf.mxu2  ;;  %v1987_v53 = vpop.f32.mrf.mxu3 }
 0x1e3   :  { %v1975_v54 = vadd.f32 %v1974_v52, %v1962_v51 }
 0x1e5   :  { %v1988_v55 = vadd.f32 %v1987_v53, %v1975_v54 }
 0x1e7   :  { %2150 = vst [vmem:[#allocation8 + $0x18] sm:$0xff] %v1988_v55 }
 0x1ea   :  { %v1976_v56 = vpop.f32.mrf.mxu2  ;;  %v1989_v57 = vpop.f32.mrf.mxu3 }
 0x1f6   :  { %v2000_v58 = vpop.f32.mrf.mxu0  ;;  %v2013_v59 = vpop.f32.mrf.mxu1 }
 0x1f7   :  { %v2001_v62 = vadd.f32 %v2000_v58, %v621_v61 }
 0x1f9   :  { %v2014_v1 = vadd.f32 %v2013_v59, %v2001_v62 }
 0x1fe   :  { %v2002_v63 = vpop.f32.mrf.mxu0  ;;  %v2015_v0 = vpop.f32.mrf.mxu1 }
 0x202   :  { %v2026_v4 = vpop.f32.mrf.mxu2  ;;  %v2039_v5 = vpop.f32.mrf.mxu3 }
 0x203   :  { %v2027_v6 = vadd.f32 %v2026_v4, %v2014_v1 }
 0x205   :  { %v2040_v7 = vadd.f32 %v2039_v5, %v2027_v6 }
 0x207   :  { %2151 = vst [vmem:[#allocation8 + $0x20] sm:$0xff] %v2040_v7 }
 0x20a   :  { %v2028_v8 = vpop.f32.mrf.mxu2  ;;  %v2041_v9 = vpop.f32.mrf.mxu3 }
 0x216   :  { %v2052_v10 = vpop.f32.mrf.mxu0  ;;  %v2065_v11 = vpop.f32.mrf.mxu1 }
 0x217   :  { %v2053_v13 = vadd.f32 %v2052_v10, %v622_v12 }
 0x219   :  { %v2066_v16 = vadd.f32 %v2065_v11, %v2053_v13 }
 0x21e   :  { %v2054_v14 = vpop.f32.mrf.mxu0  ;;  %v2067_v15 = vpop.f32.mrf.mxu1 }
 0x222   :  { %v2078_v17 = vpop.f32.mrf.mxu2  ;;  %v2091_v18 = vpop.f32.mrf.mxu3 }
 0x223   :  { %v2079_v19 = vadd.f32 %v2078_v17, %v2066_v16 }
 0x225   :  { %v2092_v20 = vadd.f32 %v2091_v18, %v2079_v19 }
 0x227   :  { %2152 = vst [vmem:[#allocation8 + $0x28] sm:$0xff] %v2092_v20 }
 0x22a   :  { %v2080_v21 = vpop.f32.mrf.mxu2  ;;  %v2093_v22 = vpop.f32.mrf.mxu3 }
 0x236   :  { %v2104_v23 = vpop.f32.mrf.mxu0  ;;  %v2117_v24 = vpop.f32.mrf.mxu1 }
 0x237   :  { %v2105_v26 = vadd.f32 %v2104_v23, %v623_v25 }
 0x239   :  { %v2118_v31 = vadd.f32 %v2117_v24, %v2105_v26 }
 0x23e   :  { %v2106_v27 = vpop.f32.mrf.mxu0  ;;  %v2119_v28 = vpop.f32.mrf.mxu1 }
 0x242   :  { %v2130_v32 = vpop.f32.mrf.mxu2  ;;  %v2143_v33 = vpop.f32.mrf.mxu3 }
 0x243   :  { %v2131_v34 = vadd.f32 %v2130_v32, %v2118_v31 }
 0x245   :  { %v2144_v35 = vadd.f32 %v2143_v33, %v2131_v34 }
 0x247   :  { %2154 = vst.msk [vmem:[#allocation8 + $0x30] sm:$0xff] %vm2153_vm0, %v2144_v35 }
 0x248   :  { %2165 = dma.vmem_to_hbm [thread:$0]  %s2161_s22, 896, %s2163_s25, [#allocation4]  }
 0x24a   :  { %v2132_v60 = vpop.f32.mrf.mxu2  ;;  %v2145_v36 = vpop.f32.mrf.mxu3 }
 0x24b   :  { %3566 = dma.done.wait [#allocation4], 896  }
 0x24c   :  { %3567 = vsyncadd [#allocation4], 4294966400 }
 0x24d   :  { %2170 = vsyncpa [#allocation3], 1 }
 0x24e   :  { %2171 = vsyncpa [#allocation6], 1 }
 0x24f   :  { %2172 = vsyncpa [#allocation4], 1 }

</bundles_post_ra>
